<compile_context>
chip_gen: v5e
topology: v5e:2x2
jax: 0.10.0
libtpu: 0.0.40
codegen_flags: <defaults>
</compile_context>

<pallas_src>
import jax
import jax.numpy as jnp
from jax.experimental import pallas as pl
from jax.experimental.pallas import tpu as pltpu

# ----------------------------- model config ---------------------------------
VOCAB      = 40     # input_size (embedding=True path)
EMB_DIM    = 50     # emb_dimention in the PyTorch module
HIDDEN     = 32     # hidden_size
OUTPUT     = 5      # output_size
NUM_LAYERS = 2      # fused kernel below is specialized to 2 layers
BATCH      = 2
SEQ        = 8

GATES      = 4 * HIDDEN          # 128 (i,f,g,o concatenated)
SLAB_LANES = 8 * HIDDEN          # 256 (lane width of W_step)

# Packed-parameter slab row offsets (all 8-row aligned).
R_WSTEP   = 0                    # (2H, 8H)  fused recurrent weight
R_XPTAB   = R_WSTEP + 2 * HIDDEN # (VOCAB, 4H) emb@W_ih0 + b0 lookup table
R_WFC     = R_XPTAB + VOCAB      # (H, O)    FC weight
R_B1      = R_WFC + HIDDEN       # (1, 4H)   layer-1 bias (b_ih1 + b_hh1)
R_BFC     = R_B1 + 8             # (1, O)    FC bias
SLAB_ROWS = R_BFC + 8            # = 152

_VMEM = pl.BlockSpec(memory_space=pltpu.MemorySpace.VMEM)
_SMEM = pl.BlockSpec(memory_space=pltpu.MemorySpace.SMEM)


# ----------------------------- fused kernel ---------------------------------
def fused_lstm_kernel(tok_ref,    # SMEM (B, T) int32 token ids
                      slab_ref,   # VMEM (SLAB_ROWS, 8H) f32 packed params
                      h_ref,      # VMEM (L, B, H) initial hidden state
                      c_ref,      # VMEM (L, B, H) initial cell state
                      out_ref):   # VMEM (B, O) logits
    B, T = tok_ref.shape
    H = HIDDEN
    G = 4 * H

    # ---- unpack the parameter slab with static slices (no extra DMAs) ------
    w_step = slab_ref[R_WSTEP:R_WSTEP + 2 * H, :]           # (2H, 8H)
    wfc    = slab_ref[R_WFC:R_WFC + H, 0:OUTPUT]            # (H, O)
    b1     = slab_ref[R_B1:R_B1 + 1, 0:G]                   # (1, 4H)
    bfc    = slab_ref[R_BFC:R_BFC + 1, 0:OUTPUT]            # (1, O)

    # ---- gather pre-projected layer-0 gate inputs per (t, b) ---------------
    # Each xp_table row already equals emb[token] @ W_ih0 + b0, so this gather
    # replaces both the embedding lookup and the hoisted input-projection
    # matmul.  It has no dependence on the recurrent state (off critical path).
    xp = []
    for t in range(T):
        rows = []
        for b in range(B):
            tok = tok_ref[b, t]
            row = slab_ref[pl.ds(R_XPTAB + tok, 1), :]      # (1, 8H)
            rows.append(row[:, 0:G])                        # (1, 4H)
        xp.append(jnp.concatenate(rows, axis=0))            # (B, 4H)

    h0 = h_ref[0]
    c0 = c_ref[0]
    h1 = h_ref[1]
    c1 = c_ref[1]

    def cell(gates, c_prev):
        # Two full-width EUP passes; the narrow lane slices below are the
        # remaining XLU realignment.  TODO(synk): gate-column permutation /
        # sublane relayout (perf-review item 2) not applied — vreg lane
        # offsets cannot be pinned reliably from the jnp level.
        sg = jax.nn.sigmoid(gates)                          # (B, 4H)
        th = jnp.tanh(gates)                                # (B, 4H)
        i_g = sg[:, 0:H]
        f_g = sg[:, H:2 * H]
        g_g = th[:, 2 * H:3 * H]
        o_g = sg[:, 3 * H:4 * H]
        c_new = f_g * c_prev + i_g * g_g
        h_new = o_g * jnp.tanh(c_new)
        return h_new, c_new

    # Layer-0 recurrent contribution for t=0 (zero when h_init is zero, but
    # kept general).  w_step[0:H, G:2G] == W_hh0.
    rec0 = jnp.dot(h0, w_step[0:H, G:2 * G],
                   preferred_element_type=jnp.float32)      # (B, 4H)

    # ---- fully unrolled recurrence: ONE fused MXU matmul per timestep ------
    # (static T=8; live ranges are small — ~40 vregs — so a plain Python loop
    #  is fine; switch to lax.fori_loop(unroll=True) only if spills appear.)
    for t in range(T):
        # layer 0: recurrent part was produced by the previous fused matmul.
        g0 = xp[t] + rec0
        h0, c0 = cell(g0, c0)
        # one (B,2H)@(2H,8H) matmul = g1(t) contribution + rec0 for t+1.
        hcat = jnp.concatenate([h0, h1], axis=1)            # (B, 2H)
        fused = jnp.dot(hcat, w_step,
                        preferred_element_type=jnp.float32)  # (B, 8H)
        g1 = fused[:, 0:G] + b1
        rec0 = fused[:, G:2 * G]
        h1, c1 = cell(g1, c1)

    # ---- FC head on the last timestep of the top layer (out[:, -1, :]) -----
    out_ref[...] = (jnp.dot(h1, wfc, preferred_element_type=jnp.float32)
                    + bfc)


# ------------------------------ param packing --------------------------------
def pack_params(params):
    """One-time host-side parameter prep:
       * fold emb @ W_ih0 + b0 into a (VOCAB, 4H) lookup table,
       * build the fused per-step recurrent weight W_step,
       * concatenate everything into a single (SLAB_ROWS, 8H) slab → one DMA.
    """
    H, G = HIDDEN, GATES
    xp_table = params["emb"] @ params["wih0"] + params["b0"]           # (V, 4H)
    top = jnp.concatenate([params["wih1"], params["whh0"]], axis=1)    # (H, 8H)
    bot = jnp.concatenate([params["whh1"],
                           jnp.zeros((H, G), jnp.float32)], axis=1)    # (H, 8H)
    w_step = jnp.concatenate([top, bot], axis=0)                       # (2H, 8H)

    def pad_to(a, rows):
        return jnp.pad(a, ((0, rows - a.shape[0]),
                           (0, SLAB_LANES - a.shape[1])))

    slab = jnp.concatenate([
        pad_to(w_step, 2 * H),            # rows R_WSTEP : +2H
        pad_to(xp_table, VOCAB),          # rows R_XPTAB : +VOCAB
        pad_to(params["wfc"], H),         # rows R_WFC   : +H
        pad_to(params["b1"], 8),          # row  R_B1
        pad_to(params["bfc"], 8),         # row  R_BFC
    ], axis=0).astype(jnp.float32)
    assert slab.shape == (SLAB_ROWS, SLAB_LANES), slab.shape
    return slab


# ------------------------------ wrappers -------------------------------------
def lstm_forward(packed_slab, x_tokens, prev_state):
    """Mirrors LSTM.forward (embedding=True): embed -> 2-layer LSTM -> last
    timestep -> Linear.  Returns (B, OUTPUT) logits."""
    h_init, c_init = prev_state                                   # (L, B, H)
    B = x_tokens.shape[0]
    return pl.pallas_call(
        fused_lstm_kernel,
        out_shape=jax.ShapeDtypeStruct((B, OUTPUT), jnp.float32),
        in_specs=[_SMEM, _VMEM, _VMEM, _VMEM],
        out_specs=_VMEM,
    )(x_tokens.astype(jnp.int32), packed_slab, h_init, c_init)


def init_params(key):
    """Deterministic synthetic parameters (PyTorch-style, pre-transposed)."""
    params = {}
    k = key
    k, sub = jax.random.split(k)
    params["emb"] = jax.random.normal(sub, (VOCAB, EMB_DIM), jnp.float32) * 0.1
    scale = 1.0 / jnp.sqrt(HIDDEN)
    in_dim = EMB_DIM
    for layer in range(NUM_LAYERS):
        k, k1, k2, k3, k4 = jax.random.split(k, 5)
        # PyTorch W_ih is (4H, in); store transposed (in, 4H). Gate order i,f,g,o.
        params[f"wih{layer}"] = jax.random.uniform(
            k1, (in_dim, 4 * HIDDEN), jnp.float32, -scale, scale)
        params[f"whh{layer}"] = jax.random.uniform(
            k2, (HIDDEN, 4 * HIDDEN), jnp.float32, -scale, scale)
        b_ih = jax.random.uniform(k3, (4 * HIDDEN,), jnp.float32, -scale, scale)
        b_hh = jax.random.uniform(k4, (4 * HIDDEN,), jnp.float32, -scale, scale)
        params[f"b{layer}"] = (b_ih + b_hh).reshape(1, 4 * HIDDEN)
        in_dim = HIDDEN
    k, k1, k2 = jax.random.split(k, 3)
    fscale = 1.0 / jnp.sqrt(HIDDEN)
    params["wfc"] = jax.random.uniform(
        k1, (HIDDEN, OUTPUT), jnp.float32, -fscale, fscale)
    params["bfc"] = jax.random.uniform(
        k2, (1, OUTPUT), jnp.float32, -fscale, fscale)
    return params


def init_state(batch_size=1):
    ht = jnp.zeros((NUM_LAYERS, batch_size, HIDDEN), jnp.float32)
    ct = jnp.zeros((NUM_LAYERS, batch_size, HIDDEN), jnp.float32)
    return ht, ct


# --------------------------- pure-JAX reference -------------------------------
def lstm_forward_ref(params, x_tokens, prev_state):
    h_init, c_init = prev_state
    x = jnp.take(params["emb"], x_tokens.astype(jnp.int32), axis=0)  # (B,T,E)
    x = jnp.transpose(x, (1, 0, 2))                                  # (T,B,E)
    H = HIDDEN
    inp = x
    for layer in range(NUM_LAYERS):
        wih, whh, b = (params[f"wih{layer}"], params[f"whh{layer}"],
                       params[f"b{layer}"])
        h, c = h_init[layer], c_init[layer]
        outs = []
        for t in range(inp.shape[0]):
            gates = inp[t] @ wih + h @ whh + b
            i = jax.nn.sigmoid(gates[:, 0:H])
            f = jax.nn.sigmoid(gates[:, H:2 * H])
            g = jnp.tanh(gates[:, 2 * H:3 * H])
            o = jax.nn.sigmoid(gates[:, 3 * H:4 * H])
            c = f * c + i * g
            h = o * jnp.tanh(c)
            outs.append(h)
        inp = jnp.stack(outs, axis=0)
    return inp[-1] @ params["wfc"] + params["bfc"]


if __name__ == "__main__":
    key = jax.random.PRNGKey(0)
    pkey, xkey = jax.random.split(key)
    params = init_params(pkey)
    packed = pack_params(params)                    # one-time host-side prep
    x_tokens = jax.random.randint(xkey, (BATCH, SEQ), 0, VOCAB, jnp.int32)
    prev_state = init_state(BATCH)

    yhat = jax.block_until_ready(lstm_forward(packed, x_tokens, prev_state))
    assert yhat.shape == (BATCH, OUTPUT), yhat.shape
    assert jnp.all(jnp.isfinite(yhat))

    ref = lstm_forward_ref(params, x_tokens, prev_state)
    assert jnp.allclose(yhat, ref, rtol=1e-3, atol=1e-3), (yhat, ref)
    print("KERNEL_OK")
</pallas_src>

<mosaic_0001>
module attributes {stable_mosaic.version = 11 : i64} {
  func.func @fused_lstm_kernel(%arg0: memref<2x8xi32, #tpu.memory_space<smem>>, %arg1: memref<152x256xf32, #tpu.memory_space<vmem>>, %arg2: memref<2x2x32xf32, #tpu.memory_space<vmem>>, %arg3: memref<2x2x32xf32, #tpu.memory_space<vmem>>, %arg4: memref<2x5xf32, #tpu.memory_space<vmem>>) attributes {dimension_semantics = [], scalar_prefetch = 0 : i64, scratch_operands = 0 : i64, tpu.core_type = #tpu.core_type<tc>} {
    %c0 = arith.constant 0 : index
    %c0_0 = arith.constant 0 : index
    %0 = vector.load %arg1[%c0, %c0_0] : memref<152x256xf32, #tpu.memory_space<vmem>>, vector<64x256xf32>
    %c104 = arith.constant 104 : index
    %c0_1 = arith.constant 0 : index
    %1 = vector.load %arg1[%c104, %c0_1] : memref<152x256xf32, #tpu.memory_space<vmem>>, vector<32x5xf32>
    %c136 = arith.constant 136 : index
    %c0_2 = arith.constant 0 : index
    %2 = vector.load %arg1[%c136, %c0_2] : memref<152x256xf32, #tpu.memory_space<vmem>>, vector<1x128xf32>
    %c144 = arith.constant 144 : index
    %c0_3 = arith.constant 0 : index
    %3 = vector.load %arg1[%c144, %c0_3] : memref<152x256xf32, #tpu.memory_space<vmem>>, vector<1x5xf32>
    %c0_4 = arith.constant 0 : index
    %c0_5 = arith.constant 0 : index
    %4 = memref.load %arg0[%c0_4, %c0_5] : memref<2x8xi32, #tpu.memory_space<smem>>
    %c64_i32 = arith.constant 64 : i32
    %5 = arith.addi %c64_i32, %4 : i32
    %6 = arith.index_cast %5 : i32 to index
    %c0_6 = arith.constant 0 : index
    %7 = vector.load %arg1[%6, %c0_6] : memref<152x256xf32, #tpu.memory_space<vmem>>, vector<1x256xf32>
    %8 = vector.extract_strided_slice %7 {offsets = [0, 0], sizes = [1, 128], strides = [1, 1]} : vector<1x256xf32> to vector<1x128xf32>
    %c1 = arith.constant 1 : index
    %c0_7 = arith.constant 0 : index
    %9 = memref.load %arg0[%c1, %c0_7] : memref<2x8xi32, #tpu.memory_space<smem>>
    %c64_i32_8 = arith.constant 64 : i32
    %10 = arith.addi %c64_i32_8, %9 : i32
    %11 = arith.index_cast %10 : i32 to index
    %c0_9 = arith.constant 0 : index
    %12 = vector.load %arg1[%11, %c0_9] : memref<152x256xf32, #tpu.memory_space<vmem>>, vector<1x256xf32>
    %13 = vector.extract_strided_slice %12 {offsets = [0, 0], sizes = [1, 128], strides = [1, 1]} : vector<1x256xf32> to vector<1x128xf32>
    %14 = tpu.concatenate %8, %13 in 0 : vector<1x128xf32>, vector<1x128xf32> -> vector<2x128xf32>
    %c0_10 = arith.constant 0 : index
    %c1_11 = arith.constant 1 : index
    %15 = memref.load %arg0[%c0_10, %c1_11] : memref<2x8xi32, #tpu.memory_space<smem>>
    %c64_i32_12 = arith.constant 64 : i32
    %16 = arith.addi %c64_i32_12, %15 : i32
    %17 = arith.index_cast %16 : i32 to index
    %c0_13 = arith.constant 0 : index
    %18 = vector.load %arg1[%17, %c0_13] : memref<152x256xf32, #tpu.memory_space<vmem>>, vector<1x256xf32>
    %19 = vector.extract_strided_slice %18 {offsets = [0, 0], sizes = [1, 128], strides = [1, 1]} : vector<1x256xf32> to vector<1x128xf32>
    %c1_14 = arith.constant 1 : index
    %c1_15 = arith.constant 1 : index
    %20 = memref.load %arg0[%c1_14, %c1_15] : memref<2x8xi32, #tpu.memory_space<smem>>
    %c64_i32_16 = arith.constant 64 : i32
    %21 = arith.addi %c64_i32_16, %20 : i32
    %22 = arith.index_cast %21 : i32 to index
    %c0_17 = arith.constant 0 : index
    %23 = vector.load %arg1[%22, %c0_17] : memref<152x256xf32, #tpu.memory_space<vmem>>, vector<1x256xf32>
    %24 = vector.extract_strided_slice %23 {offsets = [0, 0], sizes = [1, 128], strides = [1, 1]} : vector<1x256xf32> to vector<1x128xf32>
    %25 = tpu.concatenate %19, %24 in 0 : vector<1x128xf32>, vector<1x128xf32> -> vector<2x128xf32>
    %c0_18 = arith.constant 0 : index
    %c2 = arith.constant 2 : index
    %26 = memref.load %arg0[%c0_18, %c2] : memref<2x8xi32, #tpu.memory_space<smem>>
    %c64_i32_19 = arith.constant 64 : i32
    %27 = arith.addi %c64_i32_19, %26 : i32
    %28 = arith.index_cast %27 : i32 to index
    %c0_20 = arith.constant 0 : index
    %29 = vector.load %arg1[%28, %c0_20] : memref<152x256xf32, #tpu.memory_space<vmem>>, vector<1x256xf32>
    %30 = vector.extract_strided_slice %29 {offsets = [0, 0], sizes = [1, 128], strides = [1, 1]} : vector<1x256xf32> to vector<1x128xf32>
    %c1_21 = arith.constant 1 : index
    %c2_22 = arith.constant 2 : index
    %31 = memref.load %arg0[%c1_21, %c2_22] : memref<2x8xi32, #tpu.memory_space<smem>>
    %c64_i32_23 = arith.constant 64 : i32
    %32 = arith.addi %c64_i32_23, %31 : i32
    %33 = arith.index_cast %32 : i32 to index
    %c0_24 = arith.constant 0 : index
    %34 = vector.load %arg1[%33, %c0_24] : memref<152x256xf32, #tpu.memory_space<vmem>>, vector<1x256xf32>
    %35 = vector.extract_strided_slice %34 {offsets = [0, 0], sizes = [1, 128], strides = [1, 1]} : vector<1x256xf32> to vector<1x128xf32>
    %36 = tpu.concatenate %30, %35 in 0 : vector<1x128xf32>, vector<1x128xf32> -> vector<2x128xf32>
    %c0_25 = arith.constant 0 : index
    %c3 = arith.constant 3 : index
    %37 = memref.load %arg0[%c0_25, %c3] : memref<2x8xi32, #tpu.memory_space<smem>>
    %c64_i32_26 = arith.constant 64 : i32
    %38 = arith.addi %c64_i32_26, %37 : i32
    %39 = arith.index_cast %38 : i32 to index
    %c0_27 = arith.constant 0 : index
    %40 = vector.load %arg1[%39, %c0_27] : memref<152x256xf32, #tpu.memory_space<vmem>>, vector<1x256xf32>
    %41 = vector.extract_strided_slice %40 {offsets = [0, 0], sizes = [1, 128], strides = [1, 1]} : vector<1x256xf32> to vector<1x128xf32>
    %c1_28 = arith.constant 1 : index
    %c3_29 = arith.constant 3 : index
    %42 = memref.load %arg0[%c1_28, %c3_29] : memref<2x8xi32, #tpu.memory_space<smem>>
    %c64_i32_30 = arith.constant 64 : i32
    %43 = arith.addi %c64_i32_30, %42 : i32
    %44 = arith.index_cast %43 : i32 to index
    %c0_31 = arith.constant 0 : index
    %45 = vector.load %arg1[%44, %c0_31] : memref<152x256xf32, #tpu.memory_space<vmem>>, vector<1x256xf32>
    %46 = vector.extract_strided_slice %45 {offsets = [0, 0], sizes = [1, 128], strides = [1, 1]} : vector<1x256xf32> to vector<1x128xf32>
    %47 = tpu.concatenate %41, %46 in 0 : vector<1x128xf32>, vector<1x128xf32> -> vector<2x128xf32>
    %c0_32 = arith.constant 0 : index
    %c4 = arith.constant 4 : index
    %48 = memref.load %arg0[%c0_32, %c4] : memref<2x8xi32, #tpu.memory_space<smem>>
    %c64_i32_33 = arith.constant 64 : i32
    %49 = arith.addi %c64_i32_33, %48 : i32
    %50 = arith.index_cast %49 : i32 to index
    %c0_34 = arith.constant 0 : index
    %51 = vector.load %arg1[%50, %c0_34] : memref<152x256xf32, #tpu.memory_space<vmem>>, vector<1x256xf32>
    %52 = vector.extract_strided_slice %51 {offsets = [0, 0], sizes = [1, 128], strides = [1, 1]} : vector<1x256xf32> to vector<1x128xf32>
    %c1_35 = arith.constant 1 : index
    %c4_36 = arith.constant 4 : index
    %53 = memref.load %arg0[%c1_35, %c4_36] : memref<2x8xi32, #tpu.memory_space<smem>>
    %c64_i32_37 = arith.constant 64 : i32
    %54 = arith.addi %c64_i32_37, %53 : i32
    %55 = arith.index_cast %54 : i32 to index
    %c0_38 = arith.constant 0 : index
    %56 = vector.load %arg1[%55, %c0_38] : memref<152x256xf32, #tpu.memory_space<vmem>>, vector<1x256xf32>
    %57 = vector.extract_strided_slice %56 {offsets = [0, 0], sizes = [1, 128], strides = [1, 1]} : vector<1x256xf32> to vector<1x128xf32>
    %58 = tpu.concatenate %52, %57 in 0 : vector<1x128xf32>, vector<1x128xf32> -> vector<2x128xf32>
    %c0_39 = arith.constant 0 : index
    %c5 = arith.constant 5 : index
    %59 = memref.load %arg0[%c0_39, %c5] : memref<2x8xi32, #tpu.memory_space<smem>>
    %c64_i32_40 = arith.constant 64 : i32
    %60 = arith.addi %c64_i32_40, %59 : i32
    %61 = arith.index_cast %60 : i32 to index
    %c0_41 = arith.constant 0 : index
    %62 = vector.load %arg1[%61, %c0_41] : memref<152x256xf32, #tpu.memory_space<vmem>>, vector<1x256xf32>
    %63 = vector.extract_strided_slice %62 {offsets = [0, 0], sizes = [1, 128], strides = [1, 1]} : vector<1x256xf32> to vector<1x128xf32>
    %c1_42 = arith.constant 1 : index
    %c5_43 = arith.constant 5 : index
    %64 = memref.load %arg0[%c1_42, %c5_43] : memref<2x8xi32, #tpu.memory_space<smem>>
    %c64_i32_44 = arith.constant 64 : i32
    %65 = arith.addi %c64_i32_44, %64 : i32
    %66 = arith.index_cast %65 : i32 to index
    %c0_45 = arith.constant 0 : index
    %67 = vector.load %arg1[%66, %c0_45] : memref<152x256xf32, #tpu.memory_space<vmem>>, vector<1x256xf32>
    %68 = vector.extract_strided_slice %67 {offsets = [0, 0], sizes = [1, 128], strides = [1, 1]} : vector<1x256xf32> to vector<1x128xf32>
    %69 = tpu.concatenate %63, %68 in 0 : vector<1x128xf32>, vector<1x128xf32> -> vector<2x128xf32>
    %c0_46 = arith.constant 0 : index
    %c6 = arith.constant 6 : index
    %70 = memref.load %arg0[%c0_46, %c6] : memref<2x8xi32, #tpu.memory_space<smem>>
    %c64_i32_47 = arith.constant 64 : i32
    %71 = arith.addi %c64_i32_47, %70 : i32
    %72 = arith.index_cast %71 : i32 to index
    %c0_48 = arith.constant 0 : index
    %73 = vector.load %arg1[%72, %c0_48] : memref<152x256xf32, #tpu.memory_space<vmem>>, vector<1x256xf32>
    %74 = vector.extract_strided_slice %73 {offsets = [0, 0], sizes = [1, 128], strides = [1, 1]} : vector<1x256xf32> to vector<1x128xf32>
    %c1_49 = arith.constant 1 : index
    %c6_50 = arith.constant 6 : index
    %75 = memref.load %arg0[%c1_49, %c6_50] : memref<2x8xi32, #tpu.memory_space<smem>>
    %c64_i32_51 = arith.constant 64 : i32
    %76 = arith.addi %c64_i32_51, %75 : i32
    %77 = arith.index_cast %76 : i32 to index
    %c0_52 = arith.constant 0 : index
    %78 = vector.load %arg1[%77, %c0_52] : memref<152x256xf32, #tpu.memory_space<vmem>>, vector<1x256xf32>
    %79 = vector.extract_strided_slice %78 {offsets = [0, 0], sizes = [1, 128], strides = [1, 1]} : vector<1x256xf32> to vector<1x128xf32>
    %80 = tpu.concatenate %74, %79 in 0 : vector<1x128xf32>, vector<1x128xf32> -> vector<2x128xf32>
    %c0_53 = arith.constant 0 : index
    %c7 = arith.constant 7 : index
    %81 = memref.load %arg0[%c0_53, %c7] : memref<2x8xi32, #tpu.memory_space<smem>>
    %c64_i32_54 = arith.constant 64 : i32
    %82 = arith.addi %c64_i32_54, %81 : i32
    %83 = arith.index_cast %82 : i32 to index
    %c0_55 = arith.constant 0 : index
    %84 = vector.load %arg1[%83, %c0_55] : memref<152x256xf32, #tpu.memory_space<vmem>>, vector<1x256xf32>
    %85 = vector.extract_strided_slice %84 {offsets = [0, 0], sizes = [1, 128], strides = [1, 1]} : vector<1x256xf32> to vector<1x128xf32>
    %c1_56 = arith.constant 1 : index
    %c7_57 = arith.constant 7 : index
    %86 = memref.load %arg0[%c1_56, %c7_57] : memref<2x8xi32, #tpu.memory_space<smem>>
    %c64_i32_58 = arith.constant 64 : i32
    %87 = arith.addi %c64_i32_58, %86 : i32
    %88 = arith.index_cast %87 : i32 to index
    %c0_59 = arith.constant 0 : index
    %89 = vector.load %arg1[%88, %c0_59] : memref<152x256xf32, #tpu.memory_space<vmem>>, vector<1x256xf32>
    %90 = vector.extract_strided_slice %89 {offsets = [0, 0], sizes = [1, 128], strides = [1, 1]} : vector<1x256xf32> to vector<1x128xf32>
    %91 = tpu.concatenate %85, %90 in 0 : vector<1x128xf32>, vector<1x128xf32> -> vector<2x128xf32>
    %c0_60 = arith.constant 0 : index
    %c0_61 = arith.constant 0 : index
    %c0_62 = arith.constant 0 : index
    %92 = vector.load %arg2[%c0_60, %c0_61, %c0_62] : memref<2x2x32xf32, #tpu.memory_space<vmem>>, vector<1x2x32xf32>
    %93 = vector.shape_cast %92 : vector<1x2x32xf32> to vector<2x32xf32>
    %c0_63 = arith.constant 0 : index
    %c0_64 = arith.constant 0 : index
    %c0_65 = arith.constant 0 : index
    %94 = vector.load %arg3[%c0_63, %c0_64, %c0_65] : memref<2x2x32xf32, #tpu.memory_space<vmem>>, vector<1x2x32xf32>
    %95 = vector.shape_cast %94 : vector<1x2x32xf32> to vector<2x32xf32>
    %c1_66 = arith.constant 1 : index
    %c0_67 = arith.constant 0 : index
    %c0_68 = arith.constant 0 : index
    %96 = vector.load %arg2[%c1_66, %c0_67, %c0_68] : memref<2x2x32xf32, #tpu.memory_space<vmem>>, vector<1x2x32xf32>
    %97 = vector.shape_cast %96 : vector<1x2x32xf32> to vector<2x32xf32>
    %c1_69 = arith.constant 1 : index
    %c0_70 = arith.constant 0 : index
    %c0_71 = arith.constant 0 : index
    %98 = vector.load %arg3[%c1_69, %c0_70, %c0_71] : memref<2x2x32xf32, #tpu.memory_space<vmem>>, vector<1x2x32xf32>
    %99 = vector.shape_cast %98 : vector<1x2x32xf32> to vector<2x32xf32>
    %100 = vector.extract_strided_slice %0 {offsets = [0, 128], sizes = [32, 128], strides = [1, 1]} : vector<64x256xf32> to vector<32x128xf32>
    %cst = arith.constant dense<0.000000e+00> : vector<2x128xf32>
    %101 = tpu.matmul %93, %100, %cst {dimension_numbers = #tpu.dot_dimension_numbers<[1], [0], [0], [1], [0, 0, 1, 1], [], []>} : vector<2x32xf32>, vector<32x128xf32>, vector<2x128xf32> -> vector<2x128xf32>
    %102 = arith.addf %14, %101 : vector<2x128xf32>
    %103 = arith.negf %102 : vector<2x128xf32>
    %104 = math.exp %103 : vector<2x128xf32>
    %cst_72 = arith.constant 1.000000e+00 : f32
    %105 = vector.broadcast %cst_72 : f32 to vector<2x128xf32>
    %106 = arith.addf %105, %104 : vector<2x128xf32>
    %107 = arith.divf %105, %106 : vector<2x128xf32>
    %108 = math.tanh %102 : vector<2x128xf32>
    %109 = vector.extract_strided_slice %107 {offsets = [0, 0], sizes = [2, 32], strides = [1, 1]} : vector<2x128xf32> to vector<2x32xf32>
    %110 = vector.extract_strided_slice %107 {offsets = [0, 32], sizes = [2, 32], strides = [1, 1]} : vector<2x128xf32> to vector<2x32xf32>
    %111 = vector.extract_strided_slice %108 {offsets = [0, 64], sizes = [2, 32], strides = [1, 1]} : vector<2x128xf32> to vector<2x32xf32>
    %112 = vector.extract_strided_slice %107 {offsets = [0, 96], sizes = [2, 32], strides = [1, 1]} : vector<2x128xf32> to vector<2x32xf32>
    %113 = arith.mulf %110, %95 : vector<2x32xf32>
    %114 = arith.mulf %109, %111 : vector<2x32xf32>
    %115 = arith.addf %113, %114 : vector<2x32xf32>
    %116 = math.tanh %115 : vector<2x32xf32>
    %117 = arith.mulf %112, %116 : vector<2x32xf32>
    %118 = tpu.concatenate %117, %97 in 1 : vector<2x32xf32>, vector<2x32xf32> -> vector<2x64xf32>
    %cst_73 = arith.constant dense<0.000000e+00> : vector<2x256xf32>
    %119 = tpu.matmul %118, %0, %cst_73 {dimension_numbers = #tpu.dot_dimension_numbers<[1], [0], [0], [1], [0, 0, 1, 1], [], []>} : vector<2x64xf32>, vector<64x256xf32>, vector<2x256xf32> -> vector<2x256xf32>
    %120 = vector.extract_strided_slice %119 {offsets = [0, 0], sizes = [2, 128], strides = [1, 1]} : vector<2x256xf32> to vector<2x128xf32>
    %121 = vector.broadcast %2 : vector<1x128xf32> to vector<2x128xf32>
    %122 = arith.addf %120, %121 : vector<2x128xf32>
    %123 = vector.extract_strided_slice %119 {offsets = [0, 128], sizes = [2, 128], strides = [1, 1]} : vector<2x256xf32> to vector<2x128xf32>
    %124 = arith.negf %122 : vector<2x128xf32>
    %125 = math.exp %124 : vector<2x128xf32>
    %cst_74 = arith.constant 1.000000e+00 : f32
    %126 = vector.broadcast %cst_74 : f32 to vector<2x128xf32>
    %127 = arith.addf %126, %125 : vector<2x128xf32>
    %128 = arith.divf %126, %127 : vector<2x128xf32>
    %129 = math.tanh %122 : vector<2x128xf32>
    %130 = vector.extract_strided_slice %128 {offsets = [0, 0], sizes = [2, 32], strides = [1, 1]} : vector<2x128xf32> to vector<2x32xf32>
    %131 = vector.extract_strided_slice %128 {offsets = [0, 32], sizes = [2, 32], strides = [1, 1]} : vector<2x128xf32> to vector<2x32xf32>
    %132 = vector.extract_strided_slice %129 {offsets = [0, 64], sizes = [2, 32], strides = [1, 1]} : vector<2x128xf32> to vector<2x32xf32>
    %133 = vector.extract_strided_slice %128 {offsets = [0, 96], sizes = [2, 32], strides = [1, 1]} : vector<2x128xf32> to vector<2x32xf32>
    %134 = arith.mulf %131, %99 : vector<2x32xf32>
    %135 = arith.mulf %130, %132 : vector<2x32xf32>
    %136 = arith.addf %134, %135 : vector<2x32xf32>
    %137 = math.tanh %136 : vector<2x32xf32>
    %138 = arith.mulf %133, %137 : vector<2x32xf32>
    %139 = arith.addf %25, %123 : vector<2x128xf32>
    %140 = arith.negf %139 : vector<2x128xf32>
    %141 = math.exp %140 : vector<2x128xf32>
    %cst_75 = arith.constant 1.000000e+00 : f32
    %142 = vector.broadcast %cst_75 : f32 to vector<2x128xf32>
    %143 = arith.addf %142, %141 : vector<2x128xf32>
    %144 = arith.divf %142, %143 : vector<2x128xf32>
    %145 = math.tanh %139 : vector<2x128xf32>
    %146 = vector.extract_strided_slice %144 {offsets = [0, 0], sizes = [2, 32], strides = [1, 1]} : vector<2x128xf32> to vector<2x32xf32>
    %147 = vector.extract_strided_slice %144 {offsets = [0, 32], sizes = [2, 32], strides = [1, 1]} : vector<2x128xf32> to vector<2x32xf32>
    %148 = vector.extract_strided_slice %145 {offsets = [0, 64], sizes = [2, 32], strides = [1, 1]} : vector<2x128xf32> to vector<2x32xf32>
    %149 = vector.extract_strided_slice %144 {offsets = [0, 96], sizes = [2, 32], strides = [1, 1]} : vector<2x128xf32> to vector<2x32xf32>
    %150 = arith.mulf %147, %115 : vector<2x32xf32>
    %151 = arith.mulf %146, %148 : vector<2x32xf32>
    %152 = arith.addf %150, %151 : vector<2x32xf32>
    %153 = math.tanh %152 : vector<2x32xf32>
    %154 = arith.mulf %149, %153 : vector<2x32xf32>
    %155 = tpu.concatenate %154, %138 in 1 : vector<2x32xf32>, vector<2x32xf32> -> vector<2x64xf32>
    %cst_76 = arith.constant dense<0.000000e+00> : vector<2x256xf32>
    %156 = tpu.matmul %155, %0, %cst_76 {dimension_numbers = #tpu.dot_dimension_numbers<[1], [0], [0], [1], [0, 0, 1, 1], [], []>} : vector<2x64xf32>, vector<64x256xf32>, vector<2x256xf32> -> vector<2x256xf32>
    %157 = vector.extract_strided_slice %156 {offsets = [0, 0], sizes = [2, 128], strides = [1, 1]} : vector<2x256xf32> to vector<2x128xf32>
    %158 = vector.broadcast %2 : vector<1x128xf32> to vector<2x128xf32>
    %159 = arith.addf %157, %158 : vector<2x128xf32>
    %160 = vector.extract_strided_slice %156 {offsets = [0, 128], sizes = [2, 128], strides = [1, 1]} : vector<2x256xf32> to vector<2x128xf32>
    %161 = arith.negf %159 : vector<2x128xf32>
    %162 = math.exp %161 : vector<2x128xf32>
    %cst_77 = arith.constant 1.000000e+00 : f32
    %163 = vector.broadcast %cst_77 : f32 to vector<2x128xf32>
    %164 = arith.addf %163, %162 : vector<2x128xf32>
    %165 = arith.divf %163, %164 : vector<2x128xf32>
    %166 = math.tanh %159 : vector<2x128xf32>
    %167 = vector.extract_strided_slice %165 {offsets = [0, 0], sizes = [2, 32], strides = [1, 1]} : vector<2x128xf32> to vector<2x32xf32>
    %168 = vector.extract_strided_slice %165 {offsets = [0, 32], sizes = [2, 32], strides = [1, 1]} : vector<2x128xf32> to vector<2x32xf32>
    %169 = vector.extract_strided_slice %166 {offsets = [0, 64], sizes = [2, 32], strides = [1, 1]} : vector<2x128xf32> to vector<2x32xf32>
    %170 = vector.extract_strided_slice %165 {offsets = [0, 96], sizes = [2, 32], strides = [1, 1]} : vector<2x128xf32> to vector<2x32xf32>
    %171 = arith.mulf %168, %136 : vector<2x32xf32>
    %172 = arith.mulf %167, %169 : vector<2x32xf32>
    %173 = arith.addf %171, %172 : vector<2x32xf32>
    %174 = math.tanh %173 : vector<2x32xf32>
    %175 = arith.mulf %170, %174 : vector<2x32xf32>
    %176 = arith.addf %36, %160 : vector<2x128xf32>
    %177 = arith.negf %176 : vector<2x128xf32>
    %178 = math.exp %177 : vector<2x128xf32>
    %cst_78 = arith.constant 1.000000e+00 : f32
    %179 = vector.broadcast %cst_78 : f32 to vector<2x128xf32>
    %180 = arith.addf %179, %178 : vector<2x128xf32>
    %181 = arith.divf %179, %180 : vector<2x128xf32>
    %182 = math.tanh %176 : vector<2x128xf32>
    %183 = vector.extract_strided_slice %181 {offsets = [0, 0], sizes = [2, 32], strides = [1, 1]} : vector<2x128xf32> to vector<2x32xf32>
    %184 = vector.extract_strided_slice %181 {offsets = [0, 32], sizes = [2, 32], strides = [1, 1]} : vector<2x128xf32> to vector<2x32xf32>
    %185 = vector.extract_strided_slice %182 {offsets = [0, 64], sizes = [2, 32], strides = [1, 1]} : vector<2x128xf32> to vector<2x32xf32>
    %186 = vector.extract_strided_slice %181 {offsets = [0, 96], sizes = [2, 32], strides = [1, 1]} : vector<2x128xf32> to vector<2x32xf32>
    %187 = arith.mulf %184, %152 : vector<2x32xf32>
    %188 = arith.mulf %183, %185 : vector<2x32xf32>
    %189 = arith.addf %187, %188 : vector<2x32xf32>
    %190 = math.tanh %189 : vector<2x32xf32>
    %191 = arith.mulf %186, %190 : vector<2x32xf32>
    %192 = tpu.concatenate %191, %175 in 1 : vector<2x32xf32>, vector<2x32xf32> -> vector<2x64xf32>
    %cst_79 = arith.constant dense<0.000000e+00> : vector<2x256xf32>
    %193 = tpu.matmul %192, %0, %cst_79 {dimension_numbers = #tpu.dot_dimension_numbers<[1], [0], [0], [1], [0, 0, 1, 1], [], []>} : vector<2x64xf32>, vector<64x256xf32>, vector<2x256xf32> -> vector<2x256xf32>
    %194 = vector.extract_strided_slice %193 {offsets = [0, 0], sizes = [2, 128], strides = [1, 1]} : vector<2x256xf32> to vector<2x128xf32>
    %195 = vector.broadcast %2 : vector<1x128xf32> to vector<2x128xf32>
    %196 = arith.addf %194, %195 : vector<2x128xf32>
    %197 = vector.extract_strided_slice %193 {offsets = [0, 128], sizes = [2, 128], strides = [1, 1]} : vector<2x256xf32> to vector<2x128xf32>
    %198 = arith.negf %196 : vector<2x128xf32>
    %199 = math.exp %198 : vector<2x128xf32>
    %cst_80 = arith.constant 1.000000e+00 : f32
    %200 = vector.broadcast %cst_80 : f32 to vector<2x128xf32>
    %201 = arith.addf %200, %199 : vector<2x128xf32>
    %202 = arith.divf %200, %201 : vector<2x128xf32>
    %203 = math.tanh %196 : vector<2x128xf32>
    %204 = vector.extract_strided_slice %202 {offsets = [0, 0], sizes = [2, 32], strides = [1, 1]} : vector<2x128xf32> to vector<2x32xf32>
    %205 = vector.extract_strided_slice %202 {offsets = [0, 32], sizes = [2, 32], strides = [1, 1]} : vector<2x128xf32> to vector<2x32xf32>
    %206 = vector.extract_strided_slice %203 {offsets = [0, 64], sizes = [2, 32], strides = [1, 1]} : vector<2x128xf32> to vector<2x32xf32>
    %207 = vector.extract_strided_slice %202 {offsets = [0, 96], sizes = [2, 32], strides = [1, 1]} : vector<2x128xf32> to vector<2x32xf32>
    %208 = arith.mulf %205, %173 : vector<2x32xf32>
    %209 = arith.mulf %204, %206 : vector<2x32xf32>
    %210 = arith.addf %208, %209 : vector<2x32xf32>
    %211 = math.tanh %210 : vector<2x32xf32>
    %212 = arith.mulf %207, %211 : vector<2x32xf32>
    %213 = arith.addf %47, %197 : vector<2x128xf32>
    %214 = arith.negf %213 : vector<2x128xf32>
    %215 = math.exp %214 : vector<2x128xf32>
    %cst_81 = arith.constant 1.000000e+00 : f32
    %216 = vector.broadcast %cst_81 : f32 to vector<2x128xf32>
    %217 = arith.addf %216, %215 : vector<2x128xf32>
    %218 = arith.divf %216, %217 : vector<2x128xf32>
    %219 = math.tanh %213 : vector<2x128xf32>
    %220 = vector.extract_strided_slice %218 {offsets = [0, 0], sizes = [2, 32], strides = [1, 1]} : vector<2x128xf32> to vector<2x32xf32>
    %221 = vector.extract_strided_slice %218 {offsets = [0, 32], sizes = [2, 32], strides = [1, 1]} : vector<2x128xf32> to vector<2x32xf32>
    %222 = vector.extract_strided_slice %219 {offsets = [0, 64], sizes = [2, 32], strides = [1, 1]} : vector<2x128xf32> to vector<2x32xf32>
    %223 = vector.extract_strided_slice %218 {offsets = [0, 96], sizes = [2, 32], strides = [1, 1]} : vector<2x128xf32> to vector<2x32xf32>
    %224 = arith.mulf %221, %189 : vector<2x32xf32>
    %225 = arith.mulf %220, %222 : vector<2x32xf32>
    %226 = arith.addf %224, %225 : vector<2x32xf32>
    %227 = math.tanh %226 : vector<2x32xf32>
    %228 = arith.mulf %223, %227 : vector<2x32xf32>
    %229 = tpu.concatenate %228, %212 in 1 : vector<2x32xf32>, vector<2x32xf32> -> vector<2x64xf32>
    %cst_82 = arith.constant dense<0.000000e+00> : vector<2x256xf32>
    %230 = tpu.matmul %229, %0, %cst_82 {dimension_numbers = #tpu.dot_dimension_numbers<[1], [0], [0], [1], [0, 0, 1, 1], [], []>} : vector<2x64xf32>, vector<64x256xf32>, vector<2x256xf32> -> vector<2x256xf32>
    %231 = vector.extract_strided_slice %230 {offsets = [0, 0], sizes = [2, 128], strides = [1, 1]} : vector<2x256xf32> to vector<2x128xf32>
    %232 = vector.broadcast %2 : vector<1x128xf32> to vector<2x128xf32>
    %233 = arith.addf %231, %232 : vector<2x128xf32>
    %234 = vector.extract_strided_slice %230 {offsets = [0, 128], sizes = [2, 128], strides = [1, 1]} : vector<2x256xf32> to vector<2x128xf32>
    %235 = arith.negf %233 : vector<2x128xf32>
    %236 = math.exp %235 : vector<2x128xf32>
    %cst_83 = arith.constant 1.000000e+00 : f32
    %237 = vector.broadcast %cst_83 : f32 to vector<2x128xf32>
    %238 = arith.addf %237, %236 : vector<2x128xf32>
    %239 = arith.divf %237, %238 : vector<2x128xf32>
    %240 = math.tanh %233 : vector<2x128xf32>
    %241 = vector.extract_strided_slice %239 {offsets = [0, 0], sizes = [2, 32], strides = [1, 1]} : vector<2x128xf32> to vector<2x32xf32>
    %242 = vector.extract_strided_slice %239 {offsets = [0, 32], sizes = [2, 32], strides = [1, 1]} : vector<2x128xf32> to vector<2x32xf32>
    %243 = vector.extract_strided_slice %240 {offsets = [0, 64], sizes = [2, 32], strides = [1, 1]} : vector<2x128xf32> to vector<2x32xf32>
    %244 = vector.extract_strided_slice %239 {offsets = [0, 96], sizes = [2, 32], strides = [1, 1]} : vector<2x128xf32> to vector<2x32xf32>
    %245 = arith.mulf %242, %210 : vector<2x32xf32>
    %246 = arith.mulf %241, %243 : vector<2x32xf32>
    %247 = arith.addf %245, %246 : vector<2x32xf32>
    %248 = math.tanh %247 : vector<2x32xf32>
    %249 = arith.mulf %244, %248 : vector<2x32xf32>
    %250 = arith.addf %58, %234 : vector<2x128xf32>
    %251 = arith.negf %250 : vector<2x128xf32>
    %252 = math.exp %251 : vector<2x128xf32>
    %cst_84 = arith.constant 1.000000e+00 : f32
    %253 = vector.broadcast %cst_84 : f32 to vector<2x128xf32>
    %254 = arith.addf %253, %252 : vector<2x128xf32>
    %255 = arith.divf %253, %254 : vector<2x128xf32>
    %256 = math.tanh %250 : vector<2x128xf32>
    %257 = vector.extract_strided_slice %255 {offsets = [0, 0], sizes = [2, 32], strides = [1, 1]} : vector<2x128xf32> to vector<2x32xf32>
    %258 = vector.extract_strided_slice %255 {offsets = [0, 32], sizes = [2, 32], strides = [1, 1]} : vector<2x128xf32> to vector<2x32xf32>
    %259 = vector.extract_strided_slice %256 {offsets = [0, 64], sizes = [2, 32], strides = [1, 1]} : vector<2x128xf32> to vector<2x32xf32>
    %260 = vector.extract_strided_slice %255 {offsets = [0, 96], sizes = [2, 32], strides = [1, 1]} : vector<2x128xf32> to vector<2x32xf32>
    %261 = arith.mulf %258, %226 : vector<2x32xf32>
    %262 = arith.mulf %257, %259 : vector<2x32xf32>
    %263 = arith.addf %261, %262 : vector<2x32xf32>
    %264 = math.tanh %263 : vector<2x32xf32>
    %265 = arith.mulf %260, %264 : vector<2x32xf32>
    %266 = tpu.concatenate %265, %249 in 1 : vector<2x32xf32>, vector<2x32xf32> -> vector<2x64xf32>
    %cst_85 = arith.constant dense<0.000000e+00> : vector<2x256xf32>
    %267 = tpu.matmul %266, %0, %cst_85 {dimension_numbers = #tpu.dot_dimension_numbers<[1], [0], [0], [1], [0, 0, 1, 1], [], []>} : vector<2x64xf32>, vector<64x256xf32>, vector<2x256xf32> -> vector<2x256xf32>
    %268 = vector.extract_strided_slice %267 {offsets = [0, 0], sizes = [2, 128], strides = [1, 1]} : vector<2x256xf32> to vector<2x128xf32>
    %269 = vector.broadcast %2 : vector<1x128xf32> to vector<2x128xf32>
    %270 = arith.addf %268, %269 : vector<2x128xf32>
    %271 = vector.extract_strided_slice %267 {offsets = [0, 128], sizes = [2, 128], strides = [1, 1]} : vector<2x256xf32> to vector<2x128xf32>
    %272 = arith.negf %270 : vector<2x128xf32>
    %273 = math.exp %272 : vector<2x128xf32>
    %cst_86 = arith.constant 1.000000e+00 : f32
    %274 = vector.broadcast %cst_86 : f32 to vector<2x128xf32>
    %275 = arith.addf %274, %273 : vector<2x128xf32>
    %276 = arith.divf %274, %275 : vector<2x128xf32>
    %277 = math.tanh %270 : vector<2x128xf32>
    %278 = vector.extract_strided_slice %276 {offsets = [0, 0], sizes = [2, 32], strides = [1, 1]} : vector<2x128xf32> to vector<2x32xf32>
    %279 = vector.extract_strided_slice %276 {offsets = [0, 32], sizes = [2, 32], strides = [1, 1]} : vector<2x128xf32> to vector<2x32xf32>
    %280 = vector.extract_strided_slice %277 {offsets = [0, 64], sizes = [2, 32], strides = [1, 1]} : vector<2x128xf32> to vector<2x32xf32>
    %281 = vector.extract_strided_slice %276 {offsets = [0, 96], sizes = [2, 32], strides = [1, 1]} : vector<2x128xf32> to vector<2x32xf32>
    %282 = arith.mulf %279, %247 : vector<2x32xf32>
    %283 = arith.mulf %278, %280 : vector<2x32xf32>
    %284 = arith.addf %282, %283 : vector<2x32xf32>
    %285 = math.tanh %284 : vector<2x32xf32>
    %286 = arith.mulf %281, %285 : vector<2x32xf32>
    %287 = arith.addf %69, %271 : vector<2x128xf32>
    %288 = arith.negf %287 : vector<2x128xf32>
    %289 = math.exp %288 : vector<2x128xf32>
    %cst_87 = arith.constant 1.000000e+00 : f32
    %290 = vector.broadcast %cst_87 : f32 to vector<2x128xf32>
    %291 = arith.addf %290, %289 : vector<2x128xf32>
    %292 = arith.divf %290, %291 : vector<2x128xf32>
    %293 = math.tanh %287 : vector<2x128xf32>
    %294 = vector.extract_strided_slice %292 {offsets = [0, 0], sizes = [2, 32], strides = [1, 1]} : vector<2x128xf32> to vector<2x32xf32>
    %295 = vector.extract_strided_slice %292 {offsets = [0, 32], sizes = [2, 32], strides = [1, 1]} : vector<2x128xf32> to vector<2x32xf32>
    %296 = vector.extract_strided_slice %293 {offsets = [0, 64], sizes = [2, 32], strides = [1, 1]} : vector<2x128xf32> to vector<2x32xf32>
    %297 = vector.extract_strided_slice %292 {offsets = [0, 96], sizes = [2, 32], strides = [1, 1]} : vector<2x128xf32> to vector<2x32xf32>
    %298 = arith.mulf %295, %263 : vector<2x32xf32>
    %299 = arith.mulf %294, %296 : vector<2x32xf32>
    %300 = arith.addf %298, %299 : vector<2x32xf32>
    %301 = math.tanh %300 : vector<2x32xf32>
    %302 = arith.mulf %297, %301 : vector<2x32xf32>
    %303 = tpu.concatenate %302, %286 in 1 : vector<2x32xf32>, vector<2x32xf32> -> vector<2x64xf32>
    %cst_88 = arith.constant dense<0.000000e+00> : vector<2x256xf32>
    %304 = tpu.matmul %303, %0, %cst_88 {dimension_numbers = #tpu.dot_dimension_numbers<[1], [0], [0], [1], [0, 0, 1, 1], [], []>} : vector<2x64xf32>, vector<64x256xf32>, vector<2x256xf32> -> vector<2x256xf32>
    %305 = vector.extract_strided_slice %304 {offsets = [0, 0], sizes = [2, 128], strides = [1, 1]} : vector<2x256xf32> to vector<2x128xf32>
    %306 = vector.broadcast %2 : vector<1x128xf32> to vector<2x128xf32>
    %307 = arith.addf %305, %306 : vector<2x128xf32>
    %308 = vector.extract_strided_slice %304 {offsets = [0, 128], sizes = [2, 128], strides = [1, 1]} : vector<2x256xf32> to vector<2x128xf32>
    %309 = arith.negf %307 : vector<2x128xf32>
    %310 = math.exp %309 : vector<2x128xf32>
    %cst_89 = arith.constant 1.000000e+00 : f32
    %311 = vector.broadcast %cst_89 : f32 to vector<2x128xf32>
    %312 = arith.addf %311, %310 : vector<2x128xf32>
    %313 = arith.divf %311, %312 : vector<2x128xf32>
    %314 = math.tanh %307 : vector<2x128xf32>
    %315 = vector.extract_strided_slice %313 {offsets = [0, 0], sizes = [2, 32], strides = [1, 1]} : vector<2x128xf32> to vector<2x32xf32>
    %316 = vector.extract_strided_slice %313 {offsets = [0, 32], sizes = [2, 32], strides = [1, 1]} : vector<2x128xf32> to vector<2x32xf32>
    %317 = vector.extract_strided_slice %314 {offsets = [0, 64], sizes = [2, 32], strides = [1, 1]} : vector<2x128xf32> to vector<2x32xf32>
    %318 = vector.extract_strided_slice %313 {offsets = [0, 96], sizes = [2, 32], strides = [1, 1]} : vector<2x128xf32> to vector<2x32xf32>
    %319 = arith.mulf %316, %284 : vector<2x32xf32>
    %320 = arith.mulf %315, %317 : vector<2x32xf32>
    %321 = arith.addf %319, %320 : vector<2x32xf32>
    %322 = math.tanh %321 : vector<2x32xf32>
    %323 = arith.mulf %318, %322 : vector<2x32xf32>
    %324 = arith.addf %80, %308 : vector<2x128xf32>
    %325 = arith.negf %324 : vector<2x128xf32>
    %326 = math.exp %325 : vector<2x128xf32>
    %cst_90 = arith.constant 1.000000e+00 : f32
    %327 = vector.broadcast %cst_90 : f32 to vector<2x128xf32>
    %328 = arith.addf %327, %326 : vector<2x128xf32>
    %329 = arith.divf %327, %328 : vector<2x128xf32>
    %330 = math.tanh %324 : vector<2x128xf32>
    %331 = vector.extract_strided_slice %329 {offsets = [0, 0], sizes = [2, 32], strides = [1, 1]} : vector<2x128xf32> to vector<2x32xf32>
    %332 = vector.extract_strided_slice %329 {offsets = [0, 32], sizes = [2, 32], strides = [1, 1]} : vector<2x128xf32> to vector<2x32xf32>
    %333 = vector.extract_strided_slice %330 {offsets = [0, 64], sizes = [2, 32], strides = [1, 1]} : vector<2x128xf32> to vector<2x32xf32>
    %334 = vector.extract_strided_slice %329 {offsets = [0, 96], sizes = [2, 32], strides = [1, 1]} : vector<2x128xf32> to vector<2x32xf32>
    %335 = arith.mulf %332, %300 : vector<2x32xf32>
    %336 = arith.mulf %331, %333 : vector<2x32xf32>
    %337 = arith.addf %335, %336 : vector<2x32xf32>
    %338 = math.tanh %337 : vector<2x32xf32>
    %339 = arith.mulf %334, %338 : vector<2x32xf32>
    %340 = tpu.concatenate %339, %323 in 1 : vector<2x32xf32>, vector<2x32xf32> -> vector<2x64xf32>
    %cst_91 = arith.constant dense<0.000000e+00> : vector<2x256xf32>
    %341 = tpu.matmul %340, %0, %cst_91 {dimension_numbers = #tpu.dot_dimension_numbers<[1], [0], [0], [1], [0, 0, 1, 1], [], []>} : vector<2x64xf32>, vector<64x256xf32>, vector<2x256xf32> -> vector<2x256xf32>
    %342 = vector.extract_strided_slice %341 {offsets = [0, 0], sizes = [2, 128], strides = [1, 1]} : vector<2x256xf32> to vector<2x128xf32>
    %343 = vector.broadcast %2 : vector<1x128xf32> to vector<2x128xf32>
    %344 = arith.addf %342, %343 : vector<2x128xf32>
    %345 = vector.extract_strided_slice %341 {offsets = [0, 128], sizes = [2, 128], strides = [1, 1]} : vector<2x256xf32> to vector<2x128xf32>
    %346 = arith.negf %344 : vector<2x128xf32>
    %347 = math.exp %346 : vector<2x128xf32>
    %cst_92 = arith.constant 1.000000e+00 : f32
    %348 = vector.broadcast %cst_92 : f32 to vector<2x128xf32>
    %349 = arith.addf %348, %347 : vector<2x128xf32>
    %350 = arith.divf %348, %349 : vector<2x128xf32>
    %351 = math.tanh %344 : vector<2x128xf32>
    %352 = vector.extract_strided_slice %350 {offsets = [0, 0], sizes = [2, 32], strides = [1, 1]} : vector<2x128xf32> to vector<2x32xf32>
    %353 = vector.extract_strided_slice %350 {offsets = [0, 32], sizes = [2, 32], strides = [1, 1]} : vector<2x128xf32> to vector<2x32xf32>
    %354 = vector.extract_strided_slice %351 {offsets = [0, 64], sizes = [2, 32], strides = [1, 1]} : vector<2x128xf32> to vector<2x32xf32>
    %355 = vector.extract_strided_slice %350 {offsets = [0, 96], sizes = [2, 32], strides = [1, 1]} : vector<2x128xf32> to vector<2x32xf32>
    %356 = arith.mulf %353, %321 : vector<2x32xf32>
    %357 = arith.mulf %352, %354 : vector<2x32xf32>
    %358 = arith.addf %356, %357 : vector<2x32xf32>
    %359 = math.tanh %358 : vector<2x32xf32>
    %360 = arith.mulf %355, %359 : vector<2x32xf32>
    %361 = arith.addf %91, %345 : vector<2x128xf32>
    %362 = arith.negf %361 : vector<2x128xf32>
    %363 = math.exp %362 : vector<2x128xf32>
    %cst_93 = arith.constant 1.000000e+00 : f32
    %364 = vector.broadcast %cst_93 : f32 to vector<2x128xf32>
    %365 = arith.addf %364, %363 : vector<2x128xf32>
    %366 = arith.divf %364, %365 : vector<2x128xf32>
    %367 = math.tanh %361 : vector<2x128xf32>
    %368 = vector.extract_strided_slice %366 {offsets = [0, 0], sizes = [2, 32], strides = [1, 1]} : vector<2x128xf32> to vector<2x32xf32>
    %369 = vector.extract_strided_slice %366 {offsets = [0, 32], sizes = [2, 32], strides = [1, 1]} : vector<2x128xf32> to vector<2x32xf32>
    %370 = vector.extract_strided_slice %367 {offsets = [0, 64], sizes = [2, 32], strides = [1, 1]} : vector<2x128xf32> to vector<2x32xf32>
    %371 = vector.extract_strided_slice %366 {offsets = [0, 96], sizes = [2, 32], strides = [1, 1]} : vector<2x128xf32> to vector<2x32xf32>
    %372 = arith.mulf %369, %337 : vector<2x32xf32>
    %373 = arith.mulf %368, %370 : vector<2x32xf32>
    %374 = arith.addf %372, %373 : vector<2x32xf32>
    %375 = math.tanh %374 : vector<2x32xf32>
    %376 = arith.mulf %371, %375 : vector<2x32xf32>
    %377 = tpu.concatenate %376, %360 in 1 : vector<2x32xf32>, vector<2x32xf32> -> vector<2x64xf32>
    %cst_94 = arith.constant dense<0.000000e+00> : vector<2x256xf32>
    %378 = tpu.matmul %377, %0, %cst_94 {dimension_numbers = #tpu.dot_dimension_numbers<[1], [0], [0], [1], [0, 0, 1, 1], [], []>} : vector<2x64xf32>, vector<64x256xf32>, vector<2x256xf32> -> vector<2x256xf32>
    %379 = vector.extract_strided_slice %378 {offsets = [0, 0], sizes = [2, 128], strides = [1, 1]} : vector<2x256xf32> to vector<2x128xf32>
    %380 = vector.broadcast %2 : vector<1x128xf32> to vector<2x128xf32>
    %381 = arith.addf %379, %380 : vector<2x128xf32>
    %382 = arith.negf %381 : vector<2x128xf32>
    %383 = math.exp %382 : vector<2x128xf32>
    %cst_95 = arith.constant 1.000000e+00 : f32
    %384 = vector.broadcast %cst_95 : f32 to vector<2x128xf32>
    %385 = arith.addf %384, %383 : vector<2x128xf32>
    %386 = arith.divf %384, %385 : vector<2x128xf32>
    %387 = math.tanh %381 : vector<2x128xf32>
    %388 = vector.extract_strided_slice %386 {offsets = [0, 0], sizes = [2, 32], strides = [1, 1]} : vector<2x128xf32> to vector<2x32xf32>
    %389 = vector.extract_strided_slice %386 {offsets = [0, 32], sizes = [2, 32], strides = [1, 1]} : vector<2x128xf32> to vector<2x32xf32>
    %390 = vector.extract_strided_slice %387 {offsets = [0, 64], sizes = [2, 32], strides = [1, 1]} : vector<2x128xf32> to vector<2x32xf32>
    %391 = vector.extract_strided_slice %386 {offsets = [0, 96], sizes = [2, 32], strides = [1, 1]} : vector<2x128xf32> to vector<2x32xf32>
    %392 = arith.mulf %389, %358 : vector<2x32xf32>
    %393 = arith.mulf %388, %390 : vector<2x32xf32>
    %394 = arith.addf %392, %393 : vector<2x32xf32>
    %395 = math.tanh %394 : vector<2x32xf32>
    %396 = arith.mulf %391, %395 : vector<2x32xf32>
    %cst_96 = arith.constant dense<0.000000e+00> : vector<2x5xf32>
    %397 = tpu.matmul %396, %1, %cst_96 {dimension_numbers = #tpu.dot_dimension_numbers<[1], [0], [0], [1], [0, 0, 1, 1], [], []>} : vector<2x32xf32>, vector<32x5xf32>, vector<2x5xf32> -> vector<2x5xf32>
    %398 = vector.broadcast %3 : vector<1x5xf32> to vector<2x5xf32>
    %399 = arith.addf %397, %398 : vector<2x5xf32>
    %c0_97 = arith.constant 0 : index
    %c0_98 = arith.constant 0 : index
    %400 = vector.load %arg4[%c0_97, %c0_98] : memref<2x5xf32, #tpu.memory_space<vmem>>, vector<2x5xf32>
    tpu.vector_store %arg4[%c0_97, %c0_98], %399 {strides = array<i32>} : memref<2x5xf32, #tpu.memory_space<vmem>>, vector<2x5xf32>,
    return
  }
}

</mosaic_0001>

<bundles_post_ra>
// kernel: tpu_custom_call.1
= control target key start
LH: loop header
LB: loop body
LE: loop exit
PB: predicated region body
PF: predicated region fallthrough
CT: control target
= control target key end

     0   :  { %9 = vsyncpa [#allocation5], 0  ;;  %s2171_s0 = inlined_call_operand.hbm [shape: s32[2,8], index: 0, kind: input, shape index: {}]   ;;  %s2172_s1 = inlined_call_operand.hbm [shape: f32[152,256], index: 1, kind: input, shape index: {}]   ;;  %s2173_s2 = inlined_call_operand.hbm [shape: f32[2,2,32], index: 2, kind: input, shape index: {}]   ;;  %s2174_s3 = inlined_call_operand.hbm [shape: f32[2,2,32], index: 3, kind: input, shape index: {}]   ;;  %s2175_s4 = inlined_call_operand.hbm [shape: f32[2,5], index: 4, kind: output, shape index: {}]  }
   0x1   :  { %10 = vsyncpa [#allocation3], 0 }
   0x2   :  { %11 = vsyncpa [#allocation8], 0  ;;  %s39_s17 = sshll.u32 %s2173_s2, 4  ;;  %s40_s17 = int_to_ptr.hbm [resolvable:$true] %s39_s17 }
   0x3   :  { %12 = vsyncpa [#allocation4], 0  ;;  %s1797_s18 = smov [#allocation7]   ;;  %s18_s22 = sshll.u32 %s2171_s0, 4  ;;  %s19_s22 = int_to_ptr.hbm [resolvable:$true] %s18_s22 }
   0x4   :  { %s41_s19 = sshll.u32 %s1797_s18, 4  ;;  %s1798_s23 = smov 32   ;;  %s42_s19 = int_to_ptr.vmem [resolvable:$true] %s41_s19 }
   0x5   :  { %s1799_s24 = smov 2   ;;  %s1800_s25 = smov [#allocation2]  }
   0x6   :  { %47 = dma.hbm_to_vmem [thread:$0]  %s40_s17, 64, %s42_s19, [#allocation8], %s1798_s23, %s1798_s23, %s1799_s24  }
   0x7   :  { %21 = dma.hbm_to_smem %s19_s22, 32, %s1800_s25, [#allocation5]  }
   0x8   :  { %s26_s2 = sshll.u32 %s2172_s1, 4  ;;  %s1801_s28 = smov [#allocation6]   ;;  %s27_s2 = int_to_ptr.hbm [resolvable:$true] %s26_s2 }
   0x9   :  { %s28_s29 = sshll.u32 %s1801_s28, 4  ;;  %s52_s0 = sshll.u32 %s2174_s3, 4  ;;  %s29_s29 = int_to_ptr.vmem [resolvable:$true] %s28_s29  ;;  %s53_s0 = int_to_ptr.hbm [resolvable:$true] %s52_s0 }
   0xa   :  { %s1802_s6 = smov 256   ;;  %s1803_s7 = smov 16  }
   0xb   :  { %34 = dma.hbm_to_vmem [thread:$0]  %s27_s2, 4864, %s29_s29, [#allocation3], %s1802_s6, %s1802_s6, %s1803_s7  }
   0xc   :  { %s1804_s8 = smov [#allocation9]  }
   0xd   :  { %s54_s9 = sshll.u32 %s1804_s8, 4  ;;  %s55_s9 = int_to_ptr.vmem [resolvable:$true] %s54_s9 }
   0xe   :  { %60 = dma.hbm_to_vmem [thread:$0]  %s53_s0, 64, %s55_s9, [#allocation8], %s1798_s23, %s1798_s23, %s1799_s24  }
   0xf   :  { %1789 = dma.done.wait [#allocation5], 32  }
  0x10   :  { %1790 = vsyncadd [#allocation5], 4294967264 }
  0x11   :  { %1791 = dma.done.wait [#allocation3], 4864  }
  0x12   :  { %1792 = vsyncadd [#allocation3], 4294962432 }
  0x13   :  { %1793 = dma.done.wait [#allocation8], 128  }
  0x14   :  { %1794 = vsyncadd [#allocation8], 4294967168 }
  0x15   :  { %77 = sfence }
  0x16   :  { %v1848_v0 = vld [vmem:[#allocation6 + $0x38] sm:$0xff]  ;;  %v1850_v1 = vld [vmem:[#allocation6 + $0x28] sm:$0xff]  ;;  %v309_v4 = vld [vmem:[#allocation7] sm:$0x3]  ;;  %vm315_vm0 = vcmask 261120   ;;  %s1448_s1 = sld [smem:[#allocation2 + $0x80]] }
  0x17   :  { %331 = vmatpush.msra.mxu0 %v1848_v0  ;;  %v1853_v2 = vld [vmem:[#allocation6 + $0x18] sm:$0xff]  ;;  %v1856_v3 = vld [vmem:[#allocation6 + $0x8] sm:$0xff]  ;;  %s100_s3 = sld [smem:[#allocation2]]  ;;  %vm125_vm1 = vcmask 1040384   ;;  %s1805_s22 = smov 64   ;;  %v1869_v33 = vld [vmem:[#allocation6 + $0x70] sm:$0xff] }
  0x18   :  { %v310_v12 = vld [vmem:[#allocation9] sm:$0x3]  ;;  %v1871_v34 = vld [vmem:[#allocation6 + $0x78] sm:$0xff]  ;;  %v1873_v35 = vld [vmem:[#allocation6 + $0x60] sm:$0xff]  ;;  %402 = vmatpush.msra.mxu1 %v1869_v33  ;;  %534 = vmatpush.msra.mxu3 %v1869_v33  ;;  %vm390_vm6 = vcmask 523264   ;;  %s1454_s24 = sld [smem:[#allocation2 + $0x81]] }
  0x19   :  { %332 = vmatpush.msra.mxu0 %v1850_v1  ;;  %422 = vmatpush.msra.mxu2 %v1871_v34  ;;  %v1877_v36 = vld [vmem:[#allocation6 + $0x68] sm:$0xff]  ;;  %v1879_v37 = vld [vmem:[#allocation6 + $0x50] sm:$0xff]  ;;  %v1881_v38 = vld [vmem:[#allocation6 + $0x58] sm:$0xff]  ;;  %s1451_s25 = sld [smem:[#allocation2 + $0x1]] }
  0x1a   :  { %403 = vmatpush.msra.mxu1 %v1873_v35  ;;  %535 = vmatpush.msra.mxu3 %v1873_v35  ;;  %v312_v41 = vld [vmem:[#allocation7 + $0x2] sm:$0x3]  ;;  %v1895_v42 = vld [vmem:[#allocation6 + $0x40] sm:$0xff]  ;;  %v1897_v43 = vld [vmem:[#allocation6 + $0x48] sm:$0xff] }
  0x1b   :  { %333 = vmatpush.msra.mxu0 %v1853_v2  ;;  %423 = vmatpush.msra.mxu2 %v1877_v36  ;;  %v1899_v44 = vld [vmem:[#allocation6 + $0x30] sm:$0xff]  ;;  %v1903_v45 = vld [vmem:[#allocation6 + $0x20] sm:$0xff] }
  0x1c   :  { %s112_s10 = sadd.s32 64, %s1448_s1  ;;  %404 = vmatpush.msra.mxu1 %v1879_v37  ;;  %536 = vmatpush.msra.mxu3 %v1879_v37  ;;  %v1909_v46 = vld [vmem:[#allocation6 + $0x10] sm:$0xff]  ;;  %v1919_v47 = vld [vmem:[#allocation6] sm:$0xff]  ;;  %s1460_s1 = sld [smem:[#allocation2 + $0x82]] }
  0x1d   :  { %334 = vmatpush.msra.mxu0 %v1856_v3  ;;  %s113_s11 = sshra.s32 %s112_s10, 3  ;;  %s101_s12 = sadd.s32 64, %s100_s3  ;;  %424 = vmatpush.msra.mxu2 %v1881_v38  ;;  %v314_v48 = vld [vmem:[#allocation9 + $0x2] sm:$0x3]  ;;  %v1979_v53 = vld [vmem:[#allocation6 + $0x110] ss:$0 sm:$0xff] }
  0x1e   :  { %1493 = vmatmul.msk.f32.vlgmr.msra.gmra.mxu0 %vm315_vm0, %v309_v4  ;;  %s116_s13 = sand.u32 7, %s112_s10  ;;  %s1527_s14 = sshll.u32 %s113_s11, 4  ;;  %405 = vmatpush.msra.mxu1 %v1895_v42 }
  0x1f   :  { %s102_s15 = sshra.s32 %s101_s12, 3  ;;  %s119_s16 = sadd.s32 %s1527_s14, %s116_s13  ;;  %554 = vmatpush.msrb.mxu0 %v1871_v34  ;;  %425 = vmatpush.msra.mxu2 %v1897_v43 }
  0x20   :  { %s105_s17 = sand.u32 7, %s101_s12  ;;  %s1526_s18 = sshll.u32 %s102_s15, 4  ;;  %537 = vmatpush.msra.mxu3 %v1895_v42  ;;  %406 = vmatpush.msra.mxu1 %v1899_v44 }
  0x21   :  { %s108_s19 = sadd.s32 %s1526_s18, %s105_s17  ;;  %s120_s20 = scalar_lea.vmem [#allocation6], %s119_s16  ;;  %555 = vmatpush.msrb.mxu0 %v1877_v36  ;;  %426 = vmatpush.msra.mxu2 %v1848_v0 }
  0x22   :  { %v121_v5 = vld [vmem:[%s120_s20] ss:$8 sm:$0x3]  ;;  %s109_s21 = scalar_lea.vmem [#allocation6], %s108_s19  ;;  %538 = vmatpush.msra.mxu3 %v1899_v44  ;;  %407 = vmatpush.msra.mxu1 %v1903_v45  ;;  %s139_s26 = sadd.s32 64, %s1454_s24 }
  0x23   :  { %v123_v6 = vperm.slane %v121_v5, 0  ;;  %v110_v7 = vld [vmem:[%s109_s21] ss:$8 sm:$0x3]  ;;  %556 = vmatpush.msrb.mxu0 %v1881_v38  ;;  %427 = vmatpush.msra.mxu2 %v1850_v1  ;;  %s140_s27 = sshra.s32 %s139_s26, 3  ;;  %s128_s2 = sadd.s32 64, %s1451_s25 }
  0x24   :  { %539 = vmatpush.msra.mxu3 %v1903_v45  ;;  %408 = vmatpush.msra.mxu1 %v1909_v46  ;;  %s143_s28 = sand.u32 7, %s139_s26  ;;  %s1529_s29 = sshll.u32 %s140_s27, 4 }
  0x25   :  { %v126_v8 = vsel %vm125_vm1, %v110_v7, %v123_v6  ;;  %557 = vmatpush.msrb.mxu0 %v1897_v43  ;;  %428 = vmatpush.msra.mxu2 %v1853_v2  ;;  %s129_s30 = sshra.s32 %s128_s2, 3  ;;  %s146_s5 = sadd.s32 %s1529_s29, %s143_s28 }
  0x26   :  { %540 = vmatpush.msra.mxu3 %v1909_v46  ;;  %409 = vmatpush.msra.mxu1 %v1919_v47  ;;  %s132_s0 = sand.u32 7, %s128_s2  ;;  %s1528_s6 = sshll.u32 %s129_s30, 4 }
  0x27   :  { %558 = vmatpush.msrb.mxu0 %v1848_v0  ;;  %429 = vmatpush.msra.mxu2 %v1856_v3  ;;  %s135_s7 = sadd.s32 %s1528_s6, %s132_s0  ;;  %s147_s8 = scalar_lea.vmem [#allocation6], %s146_s5 }
  0x28   :  { %541 = vmatpush.msra.mxu3 %v1919_v47  ;;  %662 = vmatpush.msrb.mxu1 %v1869_v33  ;;  %v148_v52 = vld [vmem:[%s147_s8] ss:$8 sm:$0x3]  ;;  %s136_s9 = scalar_lea.vmem [#allocation6], %s135_s7  ;;  %s1457_s3 = sld [smem:[#allocation2 + $0x2]] }
  0x29   :  { %559 = vmatpush.msrb.mxu0 %v1850_v1  ;;  %682 = vmatpush.msrb.mxu2 %v1871_v34  ;;  %v150_v55 = vperm.slane %v148_v52, 0  ;;  %v137_v57 = vld [vmem:[%s136_s9] ss:$8 sm:$0x3]  ;;  %s165_s10 = sadd.s32 64, %s1460_s1  ;;  %s1466_s24 = sld [smem:[#allocation2 + $0x83]] }
  0x2a   :  { %790 = vmatpush.msrb.mxu3 %v1869_v33  ;;  %663 = vmatpush.msrb.mxu1 %v1873_v35  ;;  %s166_s11 = sshra.s32 %s165_s10, 3  ;;  %s169_s13 = sand.u32 7, %s165_s10 }
  0x2b   :  { %560 = vmatpush.msrb.mxu0 %v1853_v2  ;;  %683 = vmatpush.msrb.mxu2 %v1877_v36  ;;  %v152_v58 = vsel %vm125_vm1, %v137_v57, %v150_v55  ;;  %s1531_s14 = sshll.u32 %s166_s11, 4  ;;  %s1463_s25 = sld [smem:[#allocation2 + $0x3]] }
  0x2c   :  { %791 = vmatpush.msrb.mxu3 %v1873_v35  ;;  %664 = vmatpush.msrb.mxu1 %v1879_v37  ;;  %s172_s16 = sadd.s32 %s1531_s14, %s169_s13  ;;  %s1472_s1 = sld [smem:[#allocation2 + $0x84]] }
  0x2d   :  { %561 = vmatpush.msrb.mxu0 %v1856_v3  ;;  %684 = vmatpush.msrb.mxu2 %v1881_v38  ;;  %s173_s20 = scalar_lea.vmem [#allocation6], %s172_s16 }
  0x2e   :  { %792 = vmatpush.msrb.mxu3 %v1879_v37  ;;  %665 = vmatpush.msrb.mxu1 %v1895_v42  ;;  %s154_s12 = sadd.s32 64, %s1457_s3  ;;  %s1469_s3 = sld [smem:[#allocation2 + $0x4]] }
  0x2f   :  { %810 = vmatpush.msra.mxu0 %v1871_v34  ;;  %685 = vmatpush.msrb.mxu2 %v1897_v43  ;;  %s155_s15 = sshra.s32 %s154_s12, 3  ;;  %s158_s17 = sand.u32 7, %s154_s12 }
  0x30   :  { %793 = vmatpush.msrb.mxu3 %v1895_v42  ;;  %666 = vmatpush.msrb.mxu1 %v1899_v44  ;;  %s1530_s18 = sshll.u32 %s155_s15, 4  ;;  %s191_s26 = sadd.s32 64, %s1466_s24 }
  0x31   :  { %811 = vmatpush.msra.mxu0 %v1877_v36  ;;  %686 = vmatpush.msrb.mxu2 %v1848_v0  ;;  %s161_s19 = sadd.s32 %s1530_s18, %s158_s17  ;;  %s192_s27 = sshra.s32 %s191_s26, 3 }
  0x32   :  { %794 = vmatpush.msrb.mxu3 %v1899_v44  ;;  %667 = vmatpush.msrb.mxu1 %v1903_v45  ;;  %s162_s21 = scalar_lea.vmem [#allocation6], %s161_s19  ;;  %s180_s2 = sadd.s32 64, %s1463_s25 }
  0x33   :  { %812 = vmatpush.msra.mxu0 %v1881_v38  ;;  %687 = vmatpush.msrb.mxu2 %v1850_v1  ;;  %s195_s28 = sand.u32 7, %s191_s26  ;;  %s1533_s29 = sshll.u32 %s192_s27, 4 }
  0x34   :  { %795 = vmatpush.msrb.mxu3 %v1903_v45  ;;  %668 = vmatpush.msrb.mxu1 %v1909_v46  ;;  %s181_s30 = sshra.s32 %s180_s2, 3  ;;  %s198_s5 = sadd.s32 %s1533_s29, %s195_s28 }
  0x35   :  { %813 = vmatpush.msra.mxu0 %v1897_v43  ;;  %688 = vmatpush.msrb.mxu2 %v1853_v2  ;;  %s184_s0 = sand.u32 7, %s180_s2  ;;  %s1532_s6 = sshll.u32 %s181_s30, 4 }
  0x36   :  { %796 = vmatpush.msrb.mxu3 %v1909_v46  ;;  %669 = vmatpush.msrb.mxu1 %v1919_v47  ;;  %s187_s7 = sadd.s32 %s1532_s6, %s184_s0  ;;  %s199_s8 = scalar_lea.vmem [#allocation6], %s198_s5 }
  0x37   :  { %814 = vmatpush.msra.mxu0 %v1848_v0  ;;  %689 = vmatpush.msrb.mxu2 %v1856_v3  ;;  %s188_s9 = scalar_lea.vmem [#allocation6], %s187_s7  ;;  %s217_s10 = sadd.s32 64, %s1472_s1 }
  0x38   :  { %797 = vmatpush.msrb.mxu3 %v1919_v47  ;;  %s218_s11 = sshra.s32 %s217_s10, 3  ;;  %s206_s12 = sadd.s32 64, %s1469_s3 }
  0x39   :  { %815 = vmatpush.msra.mxu0 %v1850_v1  ;;  %s221_s13 = sand.u32 7, %s217_s10  ;;  %s1535_s14 = sshll.u32 %s218_s11, 4 }
  0x3a   :  { %s207_s15 = sshra.s32 %s206_s12, 3  ;;  %s224_s16 = sadd.s32 %s1535_s14, %s221_s13 }
  0x3b   :  { %816 = vmatpush.msra.mxu0 %v1853_v2  ;;  %s210_s17 = sand.u32 7, %s206_s12  ;;  %s1534_s18 = sshll.u32 %s207_s15, 4 }
  0x3c   :  { %s213_s19 = sadd.s32 %s1534_s18, %s210_s17  ;;  %s1478_s24 = sld [smem:[#allocation2 + $0x85]] }
  0x3d   :  { %817 = vmatpush.msra.mxu0 %v1856_v3  ;;  %s1475_s25 = sld [smem:[#allocation2 + $0x5]] }
  0x3e   :  { %s1484_s1 = sld [smem:[#allocation2 + $0x86]] }
  0x3f   :  { %s1481_s3 = sld [smem:[#allocation2 + $0x6]] }
  0x42   :  { %s243_s26 = sadd.s32 64, %s1478_s24  ;;  %s1490_s24 = sld [smem:[#allocation2 + $0x87]] }
  0x43   :  { %s244_s27 = sshra.s32 %s243_s26, 3  ;;  %s232_s2 = sadd.s32 64, %s1475_s25 }
  0x44   :  { %s247_s28 = sand.u32 7, %s243_s26  ;;  %s1537_s29 = sshll.u32 %s244_s27, 4 }
  0x45   :  { %s233_s30 = sshra.s32 %s232_s2, 3  ;;  %s250_s5 = sadd.s32 %s1537_s29, %s247_s28 }
  0x46   :  { %s236_s0 = sand.u32 7, %s232_s2  ;;  %s1536_s6 = sshll.u32 %s233_s30, 4 }
  0x47   :  { %s239_s7 = sadd.s32 %s1536_s6, %s236_s0  ;;  %s269_s10 = sadd.s32 64, %s1484_s1 }
  0x48   :  { %s270_s11 = sshra.s32 %s269_s10, 3  ;;  %s258_s12 = sadd.s32 64, %s1481_s3 }
  0x49   :  { %s273_s13 = sand.u32 7, %s269_s10  ;;  %s1539_s14 = sshll.u32 %s270_s11, 4 }
  0x4a   :  { %s259_s15 = sshra.s32 %s258_s12, 3  ;;  %s262_s17 = sand.u32 7, %s258_s12 }
  0x4b   :  { %s1538_s18 = sshll.u32 %s259_s15, 4  ;;  %s1487_s25 = sld [smem:[#allocation2 + $0x7]] }
  0x4c   :  { %s295_s26 = sadd.s32 64, %s1490_s24  ;;  %s1806_s1 = smov [#allocation10]  }
  0x4d   :  { %s296_s27 = sshra.s32 %s295_s26, 3  ;;  %s299_s28 = sand.u32 7, %s295_s26 }
  0x4e   :  { %s1541_s29 = sshll.u32 %s296_s27, 4  ;;  %s1384_s3 = sshll.u32 %s1806_s1, 4  ;;  %s1385_s3 = int_to_ptr.vmem [resolvable:$true] %s1384_s3 }
  0x4f   :  { %s1386_s11 = sshll.u32 %s2175_s4, 4  ;;  %s1387_s11 = int_to_ptr.hbm [resolvable:$true] %s1386_s11 }
  0x51   :  { %s284_s2 = sadd.s32 64, %s1487_s25 }
  0x52   :  { %s285_s30 = sshra.s32 %s284_s2, 3  ;;  %s288_s0 = sand.u32 7, %s284_s2 }
  0x53   :  { %s1540_s6 = sshll.u32 %s285_s30, 4 }
  0x9b   :  { %v336_v9 = vpop.f32.mrf.mxu0 }
  0x9c   :  { %v339_v10 = vadd.f32 %v336_v9, %v126_v8 }
  0x9e   :  { %1552 = vtanh.f32 %v339_v10  ;;  %v1494_v13 = vmul.f32 -1.442695, %v339_v10 }
  0xa0   :  { %1554 = vpow2.f32 %v1494_v13 }
  0xa4   :  { %v1553_v11 = vpop.eup %1552 }
  0xa5   :  { %366 = vrot.lane.b32.xlu0 %v1553_v11, %s1805_s22 }
  0xa6   :  { %v1555_v14 = vpop.eup %1554 }
  0xa7   :  { %v343_v15 = vadd.f32 1.0, %v1555_v14 }
  0xa9   :  { %1556 = vrcp.f32 %v343_v15  ;;  %v355_v21 = vand.u32 2147483648, %v343_v15  ;;  %vm349_vm3 = vweird.f32 %v343_v15  ;;  %v353_v22 = vand.u32 2147483647, %v343_v15 }
  0xab   :  { %v356_v24 = vor.u32 1.1754944e-38, %v355_v21  ;;  %vm354_vm5 = vcmp.eq.f32.partialorder %v353_v22, 8.507059e+37 }
  0xad   :  { %361 = vrot.lane.b32.xlu0 %v310_v12, %s1798_s23 }
  0xaf   :  { %v1557_v16 = vpop.eup %1556 }
  0xb0   :  { %v345_v17 = vmul.f32 %v1557_v16, %v343_v15  ;;  %vm350_vm2 = vweird.f32 %v1557_v16 }
  0xb1   :  { %vm351_vm4 = vmor %vm349_vm3, %vm350_vm2 }
  0xb2   :  { %v346_v18 = vsub.f32 1.0, %v345_v17 }
  0xb4   :  { %v347_v19 = vmul.f32 %v1557_v16, %v346_v18 }
  0xb6   :  { %v348_v20 = vadd.f32 %v1557_v16, %v347_v19 }
  0xb8   :  { %v352_v23 = vsel %vm351_vm4, %v1557_v16, %v348_v20 }
  0xb9   :  { %v357_v26 = vsel %vm354_vm5, %v356_v24, %v352_v23 }
 0x117   :  { %v367_v25 = vpop.permute.xlu0 %366 }
 0x118   :  { %v369_v27 = vmul.f32 %v367_v25, %v357_v26 }
 0x11a   :  { %371 = vrot.lane.b32.xlu1 %v369_v27, %s1798_s23 }
 0x11f   :  { %v362_v28 = vpop.permute.xlu0 %361 }
 0x120   :  { %v364_v29 = vmul.f32 %v362_v28, %v357_v26 }
 0x18c   :  { %v372_v30 = vpop.permute.xlu1 %371 }
 0x18d   :  { %v1865_v31 = vadd.f32 %v372_v30, %v364_v29 }
 0x18f   :  { %1558 = vtanh.f32 %v1865_v31 }
 0x195   :  { %v1559_v32 = vpop.eup %1558 }
 0x196   :  { %377 = vrot.lane.b32.xlu1 %v1559_v32, %s1805_s22 }
 0x208   :  { %v378_v39 = vpop.permute.xlu1 %377 }
 0x209   :  { %v380_v40 = vmul.f32 %v378_v39, %v357_v26 }
 0x20b   :  { %382 = vrot.lane.b32.xlu2 %v380_v40, %s1798_s23 }
 0x213   :  { %386 = vrot.lane.b32.xlu2 %v312_v41, %s1798_s23 }
 0x21b   :  { %456 = vrot.lane.b32.xlu2 %v314_v48, %s1798_s23 }
 0x265   :  { %v383_v49 = vpop.permute.xlu2 %382 }
 0x26d   :  { %v387_v50 = vpop.permute.xlu2 %386 }
 0x26e   :  { %v389_v51 = vsel %vm315_vm0, %v383_v49, %v387_v50 }
 0x26f   :  { %1495 = vmatmul.msk.f32.vlgmr.msra.gmra.mxu1 %vm390_vm6, %v389_v51  ;;  %1496 = vmatmul.msk.f32.vlgmr.msra.gmra.mxu2 %vm390_vm6, %v389_v51 }
 0x270   :  { %918 = vmatpush.msra.mxu1 %v1869_v33  ;;  %938 = vmatpush.msra.mxu2 %v1871_v34 }
 0x272   :  { %919 = vmatpush.msra.mxu1 %v1873_v35  ;;  %939 = vmatpush.msra.mxu2 %v1877_v36 }
 0x274   :  { %920 = vmatpush.msra.mxu1 %v1879_v37  ;;  %940 = vmatpush.msra.mxu2 %v1881_v38 }
 0x275   :  { %v457_v40 = vpop.permute.xlu2 %456 }
 0x276   :  { %921 = vmatpush.msra.mxu1 %v1895_v42  ;;  %941 = vmatpush.msra.mxu2 %v1897_v43 }
 0x278   :  { %922 = vmatpush.msra.mxu1 %v1899_v44  ;;  %942 = vmatpush.msra.mxu2 %v1848_v0 }
 0x27a   :  { %923 = vmatpush.msra.mxu1 %v1903_v45  ;;  %943 = vmatpush.msra.mxu2 %v1850_v1 }
 0x27c   :  { %924 = vmatpush.msra.mxu1 %v1909_v46  ;;  %944 = vmatpush.msra.mxu2 %v1853_v2 }
 0x27e   :  { %925 = vmatpush.msra.mxu1 %v1919_v47  ;;  %945 = vmatpush.msra.mxu2 %v1856_v3 }
 0x2ec   :  { %v411_v54 = vpop.f32.mrf.mxu1 }
 0x2ed   :  { %v434_v56 = vadd.f32 %v411_v54, %v1979_v53 }
 0x2ef   :  { %1560 = vtanh.f32 %v434_v56  ;;  %v1497_v63 = vmul.f32 -1.442695, %v434_v56 }
 0x2f2   :  { %v431_v59 = vpop.f32.mrf.mxu2 }
 0x2f3   :  { %v476_v60 = vadd.f32 %v431_v59, %v152_v58 }
 0x2f5   :  { %v1561_v61 = vpop.eup %1560  ;;  %1562 = vtanh.f32 %v476_v60  ;;  %v1498_v4 = vmul.f32 -1.442695, %v476_v60 }
 0x2f6   :  { %461 = vrot.lane.b32.xlu0 %v1561_v61, %s1805_s22  ;;  %1564 = vpow2.f32 %v1497_v63 }
 0x2f7   :  { %1566 = vpow2.f32 %v1498_v4  ;;  %v163_v4 = vld [vmem:[%s162_s21] ss:$8 sm:$0x3]  ;;  %s214_s21 = scalar_lea.vmem [#allocation6], %s213_s19  ;;  %s265_s19 = sadd.s32 %s1538_s18, %s262_s17 }
 0x2fb   :  { %v1563_v62 = vpop.eup %1562 }
 0x2fc   :  { %499 = vrot.lane.b32.xlu1 %v1563_v62, %s1805_s22  ;;  %v1565_v5 = vpop.eup %1564  ;;  %v174_v62 = vld [vmem:[%s173_s20] ss:$8 sm:$0x3]  ;;  %s225_s20 = scalar_lea.vmem [#allocation6], %s224_s16  ;;  %s276_s16 = sadd.s32 %s1539_s14, %s273_s13 }
 0x2fd   :  { %v438_v6 = vadd.f32 1.0, %v1565_v5  ;;  %v1567_v7 = vpop.eup %1566  ;;  %v176_v63 = vperm.slane %v174_v62, 0 }
 0x2fe   :  { %v480_v8 = vadd.f32 1.0, %v1567_v7 }
 0x2ff   :  { %1568 = vrcp.f32 %v438_v6  ;;  %v450_v17 = vand.u32 2147483648, %v438_v6  ;;  %vm444_vm8 = vweird.f32 %v438_v6  ;;  %v448_v18 = vand.u32 2147483647, %v438_v6 }
 0x300   :  { %1570 = vrcp.f32 %v480_v8  ;;  %v492_v25 = vand.u32 2147483648, %v480_v8  ;;  %vm486_vm12 = vweird.f32 %v480_v8  ;;  %v490_v27 = vand.u32 2147483647, %v480_v8 }
 0x301   :  { %v451_v21 = vor.u32 1.1754944e-38, %v450_v17  ;;  %vm449_vm10 = vcmp.eq.f32.partialorder %v448_v18, 8.507059e+37  ;;  %v178_v5 = vsel %vm125_vm1, %v163_v4, %v176_v63 }
 0x302   :  { %v493_v29 = vor.u32 1.1754944e-38, %v492_v25  ;;  %vm491_vm14 = vcmp.eq.f32.partialorder %v490_v27, 8.507059e+37 }
 0x305   :  { %v1569_v9 = vpop.eup %1568 }
 0x306   :  { %v440_v10 = vmul.f32 %v1569_v9, %v438_v6  ;;  %v1571_v11 = vpop.eup %1570  ;;  %vm445_vm7 = vweird.f32 %v1569_v9 }
 0x307   :  { %v482_v13 = vmul.f32 %v1571_v11, %v480_v8  ;;  %vm446_vm9 = vmor %vm444_vm8, %vm445_vm7  ;;  %vm487_vm11 = vweird.f32 %v1571_v11 }
 0x308   :  { %v441_v12 = vsub.f32 1.0, %v440_v10  ;;  %vm488_vm13 = vmor %vm486_vm12, %vm487_vm11 }
 0x309   :  { %v483_v15 = vsub.f32 1.0, %v482_v13 }
 0x30a   :  { %v442_v14 = vmul.f32 %v1569_v9, %v441_v12 }
 0x30b   :  { %v484_v19 = vmul.f32 %v1571_v11, %v483_v15 }
 0x30c   :  { %v443_v16 = vadd.f32 %v1569_v9, %v442_v14 }
 0x30d   :  { %v485_v22 = vadd.f32 %v1571_v11, %v484_v19 }
 0x30e   :  { %v447_v20 = vsel %vm446_vm9, %v1569_v9, %v443_v16 }
 0x30f   :  { %v452_v23 = vsel %vm449_vm10, %v451_v21, %v447_v20  ;;  %v489_v28 = vsel %vm488_vm13, %v1571_v11, %v485_v22 }
 0x310   :  { %v494_v32 = vsel %vm491_vm14, %v493_v29, %v489_v28  ;;  %v459_v41 = vmul.f32 %v457_v40, %v452_v23 }
 0x311   :  { %v497_v50 = vmul.f32 %v494_v32, %v1865_v31 }
 0x368   :  { %v462_v24 = vpop.permute.xlu0 %461 }
 0x369   :  { %v464_v26 = vmul.f32 %v462_v24, %v452_v23 }
 0x36b   :  { %466 = vrot.lane.b32.xlu0 %v464_v26, %s1798_s23 }
 0x36e   :  { %v500_v30 = vpop.permute.xlu1 %499 }
 0x36f   :  { %v502_v39 = vmul.f32 %v500_v30, %v494_v32 }
 0x371   :  { %504 = vrot.lane.b32.xlu1 %v502_v39, %s1798_s23 }
 0x3dd   :  { %v467_v48 = vpop.permute.xlu0 %466 }
 0x3de   :  { %v1987_v49 = vadd.f32 %v467_v48, %v459_v41 }
 0x3e0   :  { %1572 = vtanh.f32 %v1987_v49 }
 0x3e3   :  { %v505_v51 = vpop.permute.xlu1 %504 }
 0x3e4   :  { %v1991_v52 = vadd.f32 %v505_v51, %v497_v50 }
 0x3e6   :  { %v1573_v54 = vpop.eup %1572  ;;  %1574 = vtanh.f32 %v1991_v52 }
 0x3e7   :  { %472 = vrot.lane.b32.xlu2 %v1573_v54, %s1805_s22 }
 0x3ec   :  { %v1575_v55 = vpop.eup %1574 }
 0x3ed   :  { %510 = vrot.lane.b32.xlu0 %v1575_v55, %s1805_s22 }
 0x441   :  { %v473_v56 = vpop.permute.xlu2 %472 }
 0x442   :  { %v475_v57 = vmul.f32 %v473_v56, %v452_v23 }
 0x444   :  { %519 = vrot.lane.b32.xlu2 %v475_v57, %s1805_s22 }
 0x45f   :  { %v511_v58 = vpop.permute.xlu0 %510 }
 0x460   :  { %v513_v59 = vmul.f32 %v511_v58, %v494_v32 }
 0x462   :  { %515 = vrot.lane.b32.xlu1 %v513_v59, %s1798_s23 }
 0x49e   :  { %v520_v31 = vpop.permute.xlu2 %519 }
 0x4d4   :  { %v516_v60 = vpop.permute.xlu1 %515 }
 0x4d5   :  { %v522_v61 = vsel %vm315_vm0, %v516_v60, %v520_v31 }
 0x4d6   :  { %1499 = vmatmul.msk.f32.vlgmr.msra.gmra.mxu3 %vm390_vm6, %v522_v61  ;;  %1500 = vmatmul.msk.f32.vlgmr.msrb.gmra.mxu0 %vm390_vm6, %v522_v61 }
 0x4d7   :  { %1046 = vmatpush.msra.mxu3 %v1869_v33  ;;  %1066 = vmatpush.msrb.mxu0 %v1871_v34 }
 0x4d9   :  { %1047 = vmatpush.msra.mxu3 %v1873_v35  ;;  %1067 = vmatpush.msrb.mxu0 %v1877_v36 }
 0x4db   :  { %1048 = vmatpush.msra.mxu3 %v1879_v37  ;;  %1068 = vmatpush.msrb.mxu0 %v1881_v38 }
 0x4dd   :  { %1049 = vmatpush.msra.mxu3 %v1895_v42  ;;  %1069 = vmatpush.msrb.mxu0 %v1897_v43 }
 0x4df   :  { %1050 = vmatpush.msra.mxu3 %v1899_v44  ;;  %1070 = vmatpush.msrb.mxu0 %v1848_v0 }
 0x4e1   :  { %1051 = vmatpush.msra.mxu3 %v1903_v45  ;;  %1071 = vmatpush.msrb.mxu0 %v1850_v1 }
 0x4e3   :  { %1052 = vmatpush.msra.mxu3 %v1909_v46  ;;  %1072 = vmatpush.msrb.mxu0 %v1853_v2 }
 0x4e5   :  { %1053 = vmatpush.msra.mxu3 %v1919_v47  ;;  %1073 = vmatpush.msrb.mxu0 %v1856_v3 }
 0x553   :  { %v563_v6 = vpop.f32.mrf.mxu0 }
 0x554   :  { %v604_v7 = vadd.f32 %v563_v6, %v178_v5 }
 0x556   :  { %1576 = vtanh.f32 %v604_v7  ;;  %v1502_v12 = vmul.f32 -1.442695, %v604_v7 }
 0x559   :  { %v543_v8 = vpop.f32.mrf.mxu3 }
 0x55a   :  { %v566_v9 = vadd.f32 %v543_v8, %v1979_v53 }
 0x55c   :  { %v1577_v10 = vpop.eup %1576  ;;  %1578 = vtanh.f32 %v566_v9  ;;  %v1501_v13 = vmul.f32 -1.442695, %v566_v9 }
 0x55d   :  { %627 = vrot.lane.b32.xlu1 %v1577_v10, %s1805_s22  ;;  %1580 = vpow2.f32 %v1502_v12 }
 0x55e   :  { %1582 = vpow2.f32 %v1501_v13 }
 0x562   :  { %v1579_v11 = vpop.eup %1578 }
 0x563   :  { %589 = vrot.lane.b32.xlu0 %v1579_v11, %s1805_s22  ;;  %v1581_v14 = vpop.eup %1580 }
 0x564   :  { %v608_v15 = vadd.f32 1.0, %v1581_v14  ;;  %v1583_v16 = vpop.eup %1582 }
 0x565   :  { %v570_v17 = vadd.f32 1.0, %v1583_v16 }
 0x566   :  { %1584 = vrcp.f32 %v608_v15  ;;  %v620_v26 = vand.u32 2147483648, %v608_v15  ;;  %vm614_vm2 = vweird.f32 %v608_v15  ;;  %v618_v27 = vand.u32 2147483647, %v608_v15 }
 0x567   :  { %1586 = vrcp.f32 %v570_v17  ;;  %v582_v41 = vand.u32 2147483648, %v570_v17  ;;  %vm576_vm7 = vweird.f32 %v570_v17  ;;  %v580_v50 = vand.u32 2147483647, %v570_v17 }
 0x568   :  { %v621_v30 = vor.u32 1.1754944e-38, %v620_v26  ;;  %vm619_vm4 = vcmp.eq.f32.partialorder %v618_v27, 8.507059e+37 }
 0x569   :  { %v583_v54 = vor.u32 1.1754944e-38, %v582_v41  ;;  %vm581_vm9 = vcmp.eq.f32.partialorder %v580_v50, 8.507059e+37 }
 0x56c   :  { %v1585_v18 = vpop.eup %1584 }
 0x56d   :  { %v610_v19 = vmul.f32 %v1585_v18, %v608_v15  ;;  %v1587_v20 = vpop.eup %1586  ;;  %vm615_vm15 = vweird.f32 %v1585_v18 }
 0x56e   :  { %v572_v22 = vmul.f32 %v1587_v20, %v570_v17  ;;  %vm616_vm3 = vmor %vm614_vm2, %vm615_vm15  ;;  %vm577_vm5 = vweird.f32 %v1587_v20 }
 0x56f   :  { %v611_v21 = vsub.f32 1.0, %v610_v19  ;;  %vm578_vm8 = vmor %vm576_vm7, %vm577_vm5 }
 0x570   :  { %v573_v24 = vsub.f32 1.0, %v572_v22 }
 0x571   :  { %v612_v23 = vmul.f32 %v1585_v18, %v611_v21 }
 0x572   :  { %v574_v28 = vmul.f32 %v1587_v20, %v573_v24 }
 0x573   :  { %v613_v25 = vadd.f32 %v1585_v18, %v612_v23 }
 0x574   :  { %v575_v32 = vadd.f32 %v1587_v20, %v574_v28 }
 0x575   :  { %v617_v29 = vsel %vm616_vm3, %v1585_v18, %v613_v25 }
 0x576   :  { %v622_v40 = vsel %vm619_vm4, %v621_v30, %v617_v29  ;;  %v579_v51 = vsel %vm578_vm8, %v1587_v20, %v575_v32 }
 0x577   :  { %v584_v56 = vsel %vm581_vm9, %v583_v54, %v579_v51  ;;  %v625_v61 = vmul.f32 %v622_v40, %v1991_v52 }
 0x578   :  { %v587_v58 = vmul.f32 %v584_v56, %v1987_v49 }
 0x5cf   :  { %v628_v39 = vpop.permute.xlu1 %627 }
 0x5d0   :  { %v630_v48 = vmul.f32 %v628_v39, %v622_v40 }
 0x5d2   :  { %632 = vrot.lane.b32.xlu0 %v630_v48, %s1798_s23 }
 0x5d5   :  { %v590_v55 = vpop.permute.xlu0 %589 }
 0x5d6   :  { %v592_v57 = vmul.f32 %v590_v55, %v584_v56 }
 0x5d8   :  { %594 = vrot.lane.b32.xlu2 %v592_v57, %s1798_s23 }
 0x632   :  { %v595_v59 = vpop.permute.xlu2 %594 }
 0x633   :  { %v2024_v31 = vadd.f32 %v595_v59, %v587_v58 }
 0x635   :  { %1588 = vtanh.f32 %v2024_v31 }
 0x63b   :  { %v1589_v60 = vpop.eup %1588 }
 0x63c   :  { %600 = vrot.lane.b32.xlu1 %v1589_v60, %s1805_s22 }
 0x644   :  { %v633_v62 = vpop.permute.xlu0 %632 }
 0x645   :  { %v2029_v63 = vadd.f32 %v633_v62, %v625_v61 }
 0x647   :  { %1590 = vtanh.f32 %v2029_v63 }
 0x64d   :  { %v1591_v4 = vpop.eup %1590 }
 0x64e   :  { %638 = vrot.lane.b32.xlu2 %v1591_v4, %s1805_s22 }
 0x6a8   :  { %v639_v5 = vpop.permute.xlu2 %638 }
 0x6a9   :  { %v641_v49 = vmul.f32 %v639_v5, %v622_v40 }
 0x6ab   :  { %643 = vrot.lane.b32.xlu0 %v641_v49, %s1798_s23 }
 0x6ae   :  { %v601_v6 = vpop.permute.xlu1 %600 }
 0x6af   :  { %v603_v7 = vmul.f32 %v601_v6, %v584_v56 }
 0x6b1   :  { %647 = vrot.lane.b32.xlu1 %v603_v7, %s1805_s22 }
 0x71d   :  { %v644_v8 = vpop.permute.xlu0 %643 }
 0x723   :  { %v648_v9 = vpop.permute.xlu1 %647 }
 0x724   :  { %v650_v52 = vsel %vm315_vm0, %v644_v8, %v648_v9 }
 0x725   :  { %1503 = vmatmul.msk.f32.vlgmr.msrb.gmra.mxu1 %vm390_vm6, %v650_v52  ;;  %1504 = vmatmul.msk.f32.vlgmr.msrb.gmra.mxu2 %vm390_vm6, %v650_v52 }
 0x726   :  { %1174 = vmatpush.msrb.mxu1 %v1869_v33  ;;  %1194 = vmatpush.msrb.mxu2 %v1871_v34 }
 0x728   :  { %1175 = vmatpush.msrb.mxu1 %v1873_v35  ;;  %1195 = vmatpush.msrb.mxu2 %v1877_v36 }
 0x72a   :  { %1176 = vmatpush.msrb.mxu1 %v1879_v37  ;;  %1196 = vmatpush.msrb.mxu2 %v1881_v38 }
 0x72c   :  { %1177 = vmatpush.msrb.mxu1 %v1895_v42  ;;  %1197 = vmatpush.msrb.mxu2 %v1897_v43 }
 0x72e   :  { %1178 = vmatpush.msrb.mxu1 %v1899_v44  ;;  %1198 = vmatpush.msrb.mxu2 %v1848_v0  ;;  %v200_v0 = vld [vmem:[%s199_s8] ss:$8 sm:$0x3]  ;;  %s251_s8 = scalar_lea.vmem [#allocation6], %s250_s5  ;;  %s302_s5 = sadd.s32 %s1541_s29, %s299_s28 }
 0x730   :  { %1179 = vmatpush.msrb.mxu1 %v1903_v45  ;;  %1199 = vmatpush.msrb.mxu2 %v1850_v1 }
 0x732   :  { %1180 = vmatpush.msrb.mxu1 %v1909_v46  ;;  %1200 = vmatpush.msrb.mxu2 %v1853_v2  ;;  %v202_v2 = vperm.slane %v200_v0, 0 }
 0x734   :  { %1181 = vmatpush.msrb.mxu1 %v1919_v47  ;;  %1201 = vmatpush.msrb.mxu2 %v1856_v3  ;;  %v189_v3 = vld [vmem:[%s188_s9] ss:$8 sm:$0x3]  ;;  %s240_s9 = scalar_lea.vmem [#allocation6], %s239_s7  ;;  %s291_s7 = sadd.s32 %s1540_s6, %s288_s0 }
 0x735   :  { %v204_v36 = vsel %vm125_vm1, %v189_v3, %v202_v2 }
 0x7a2   :  { %v671_v1 = vpop.f32.mrf.mxu1 }
 0x7a3   :  { %v694_v34 = vadd.f32 %v671_v1, %v1979_v53 }
 0x7a5   :  { %1592 = vtanh.f32 %v694_v34  ;;  %v1505_v12 = vmul.f32 -1.442695, %v694_v34 }
 0x7a8   :  { %v691_v38 = vpop.f32.mrf.mxu2 }
 0x7a9   :  { %v732_v43 = vadd.f32 %v691_v38, %v204_v36 }
 0x7ab   :  { %v1593_v10 = vpop.eup %1592  ;;  %1594 = vtanh.f32 %v732_v43  ;;  %v1506_v17 = vmul.f32 -1.442695, %v732_v43 }
 0x7ac   :  { %717 = vrot.lane.b32.xlu2 %v1593_v10, %s1805_s22  ;;  %1596 = vpow2.f32 %v1505_v12 }
 0x7b1   :  { %v1595_v11 = vpop.eup %1594 }
 0x7b2   :  { %755 = vrot.lane.b32.xlu0 %v1595_v11, %s1805_s22  ;;  %v1597_v13 = vpop.eup %1596 }
 0x7b3   :  { %v698_v14 = vadd.f32 1.0, %v1597_v13 }
 0x7b5   :  { %1598 = vrcp.f32 %v698_v14  ;;  %v710_v21 = vand.u32 2147483648, %v698_v14  ;;  %vm704_vm11 = vweird.f32 %v698_v14  ;;  %v708_v23 = vand.u32 2147483647, %v698_v14 }
 0x7b6   :  { %1600 = vpow2.f32 %v1506_v17 }
 0x7b7   :  { %v711_v26 = vor.u32 1.1754944e-38, %v710_v21  ;;  %vm709_vm13 = vcmp.eq.f32.partialorder %v708_v23, 8.507059e+37 }
 0x7bb   :  { %v1599_v15 = vpop.eup %1598 }
 0x7bc   :  { %v700_v16 = vmul.f32 %v1599_v15, %v698_v14  ;;  %vm705_vm10 = vweird.f32 %v1599_v15  ;;  %v1601_v22 = vpop.eup %1600 }
 0x7bd   :  { %vm706_vm12 = vmor %vm704_vm11, %vm705_vm10  ;;  %v736_v25 = vadd.f32 1.0, %v1601_v22 }
 0x7be   :  { %v701_v18 = vsub.f32 1.0, %v700_v16 }
 0x7bf   :  { %1602 = vrcp.f32 %v736_v25  ;;  %v748_v48 = vand.u32 2147483648, %v736_v25  ;;  %vm742_vm15 = vweird.f32 %v736_v25  ;;  %v746_v50 = vand.u32 2147483647, %v736_v25 }
 0x7c0   :  { %v702_v19 = vmul.f32 %v1599_v15, %v701_v18 }
 0x7c1   :  { %v749_v54 = vor.u32 1.1754944e-38, %v748_v48  ;;  %vm747_vm3 = vcmp.eq.f32.partialorder %v746_v50, 8.507059e+37 }
 0x7c2   :  { %v703_v20 = vadd.f32 %v1599_v15, %v702_v19 }
 0x7c4   :  { %v707_v24 = vsel %vm706_vm12, %v1599_v15, %v703_v20 }
 0x7c5   :  { %v712_v28 = vsel %vm709_vm13, %v711_v26, %v707_v24  ;;  %v1603_v30 = vpop.eup %1602 }
 0x7c6   :  { %v738_v32 = vmul.f32 %v1603_v30, %v736_v25  ;;  %vm743_vm14 = vweird.f32 %v1603_v30  ;;  %v715_v58 = vmul.f32 %v712_v28, %v2024_v31 }
 0x7c7   :  { %vm744_vm2 = vmor %vm742_vm15, %vm743_vm14 }
 0x7c8   :  { %v739_v39 = vsub.f32 1.0, %v738_v32 }
 0x7ca   :  { %v740_v40 = vmul.f32 %v1603_v30, %v739_v39 }
 0x7cc   :  { %v741_v41 = vadd.f32 %v1603_v30, %v740_v40 }
 0x7ce   :  { %v745_v51 = vsel %vm744_vm2, %v1603_v30, %v741_v41 }
 0x7cf   :  { %v750_v56 = vsel %vm747_vm3, %v749_v54, %v745_v51 }
 0x7d0   :  { %v753_v61 = vmul.f32 %v750_v56, %v2029_v63 }
 0x806   :  { %v718_v27 = vpop.permute.xlu2 %717 }
 0x807   :  { %v720_v29 = vmul.f32 %v718_v27, %v712_v28 }
 0x809   :  { %722 = vrot.lane.b32.xlu1 %v720_v29, %s1798_s23 }
 0x824   :  { %v756_v55 = vpop.permute.xlu0 %755 }
 0x825   :  { %v758_v57 = vmul.f32 %v756_v55, %v750_v56 }
 0x827   :  { %760 = vrot.lane.b32.xlu2 %v758_v57, %s1798_s23 }
 0x87b   :  { %v723_v59 = vpop.permute.xlu1 %722 }
 0x87c   :  { %v2061_v60 = vadd.f32 %v723_v59, %v715_v58 }
 0x87e   :  { %1604 = vtanh.f32 %v2061_v60 }
 0x881   :  { %v761_v62 = vpop.permute.xlu2 %760 }
 0x882   :  { %v2065_v4 = vadd.f32 %v761_v62, %v753_v61 }
 0x884   :  { %v1605_v5 = vpop.eup %1604  ;;  %1606 = vtanh.f32 %v2065_v4 }
 0x885   :  { %728 = vrot.lane.b32.xlu0 %v1605_v5, %s1805_s22 }
 0x88a   :  { %v1607_v49 = vpop.eup %1606 }
 0x88b   :  { %766 = vrot.lane.b32.xlu1 %v1607_v49, %s1805_s22  ;;  %v252_v49 = vld [vmem:[%s251_s8] ss:$8 sm:$0x3]  ;;  %s303_s8 = scalar_lea.vmem [#allocation6], %s302_s5 }
 0x8f7   :  { %v729_v6 = vpop.permute.xlu0 %728 }
 0x8f8   :  { %v731_v31 = vmul.f32 %v729_v6, %v712_v28 }
 0x8fa   :  { %775 = vrot.lane.b32.xlu0 %v731_v31, %s1805_s22  ;;  %v254_v31 = vperm.slane %v252_v49, 0 }
 0x8fd   :  { %v767_v7 = vpop.permute.xlu1 %766 }
 0x8fe   :  { %v769_v8 = vmul.f32 %v767_v7, %v750_v56 }
 0x900   :  { %771 = vrot.lane.b32.xlu2 %v769_v8, %s1798_s23  ;;  %v241_v8 = vld [vmem:[%s240_s9] ss:$8 sm:$0x3]  ;;  %s292_s9 = scalar_lea.vmem [#allocation6], %s291_s7 }
 0x95a   :  { %v772_v63 = vpop.permute.xlu2 %771 }
 0x96c   :  { %v776_v9 = vpop.permute.xlu0 %775 }
 0x96d   :  { %v778_v52 = vsel %vm315_vm0, %v772_v63, %v776_v9  ;;  %v256_v63 = vsel %vm125_vm1, %v241_v8, %v254_v31 }
 0x96e   :  { %1507 = vmatmul.msk.f32.vlgmr.msrb.gmra.mxu3 %vm390_vm6, %v778_v52  ;;  %1508 = vmatmul.msk.f32.vlgmr.msra.gmra.mxu0 %vm390_vm6, %v778_v52 }
 0x96f   :  { %1302 = vmatpush.msrb.mxu3 %v1869_v33  ;;  %v226_v33 = vld [vmem:[%s225_s20] ss:$8 sm:$0x3]  ;;  %s277_s20 = scalar_lea.vmem [#allocation6], %s276_s16 }
 0x971   :  { %1303 = vmatpush.msrb.mxu3 %v1873_v35  ;;  %v228_v35 = vperm.slane %v226_v33, 0 }
 0x973   :  { %1304 = vmatpush.msrb.mxu3 %v1879_v37  ;;  %v215_v37 = vld [vmem:[%s214_s21] ss:$8 sm:$0x3]  ;;  %s266_s21 = scalar_lea.vmem [#allocation6], %s265_s19 }
 0x975   :  { %1305 = vmatpush.msrb.mxu3 %v1895_v42  ;;  %v230_v42 = vsel %vm125_vm1, %v215_v37, %v228_v35 }
 0x977   :  { %1306 = vmatpush.msrb.mxu3 %v1899_v44 }
 0x979   :  { %1307 = vmatpush.msrb.mxu3 %v1903_v45 }
 0x97b   :  { %1308 = vmatpush.msrb.mxu3 %v1909_v46 }
 0x97d   :  { %1309 = vmatpush.msrb.mxu3 %v1919_v47 }
 0x9eb   :  { %v819_v44 = vpop.f32.mrf.mxu0 }
 0x9ec   :  { %v860_v45 = vadd.f32 %v819_v44, %v230_v42 }
 0x9ee   :  { %1608 = vtanh.f32 %v860_v45  ;;  %v1510_v2 = vmul.f32 -1.442695, %v860_v45 }
 0x9f1   :  { %v799_v46 = vpop.f32.mrf.mxu3 }
 0x9f2   :  { %v822_v47 = vadd.f32 %v799_v46, %v1979_v53 }
 0x9f4   :  { %v1609_v0 = vpop.eup %1608  ;;  %1610 = vtanh.f32 %v822_v47  ;;  %v1509_v43 = vmul.f32 -1.442695, %v822_v47 }
 0x9f5   :  { %883 = vrot.lane.b32.xlu2 %v1609_v0, %s1805_s22  ;;  %1612 = vpow2.f32 %v1510_v2 }
 0x9fa   :  { %v1611_v1 = vpop.eup %1610 }
 0x9fb   :  { %845 = vrot.lane.b32.xlu1 %v1611_v1, %s1805_s22  ;;  %v1613_v34 = vpop.eup %1612 }
 0x9fc   :  { %v864_v3 = vadd.f32 1.0, %v1613_v34 }
 0x9fe   :  { %1614 = vrcp.f32 %v864_v3  ;;  %v876_v13 = vand.u32 2147483648, %v864_v3  ;;  %vm870_vm5 = vweird.f32 %v864_v3  ;;  %v874_v15 = vand.u32 2147483647, %v864_v3 }
 0x9ff   :  { %1616 = vpow2.f32 %v1509_v43 }
 0xa00   :  { %v877_v18 = vor.u32 1.1754944e-38, %v876_v13  ;;  %vm875_vm8 = vcmp.eq.f32.partialorder %v874_v15, 8.507059e+37 }
 0xa04   :  { %v1615_v36 = vpop.eup %1614 }
 0xa05   :  { %v866_v38 = vmul.f32 %v1615_v36, %v864_v3  ;;  %vm871_vm4 = vweird.f32 %v1615_v36  ;;  %v1617_v14 = vpop.eup %1616 }
 0xa06   :  { %vm872_vm7 = vmor %vm870_vm5, %vm871_vm4  ;;  %v826_v17 = vadd.f32 1.0, %v1617_v14 }
 0xa07   :  { %v867_v10 = vsub.f32 1.0, %v866_v38 }
 0xa08   :  { %1618 = vrcp.f32 %v826_v17  ;;  %v838_v27 = vand.u32 2147483648, %v826_v17  ;;  %vm832_vm10 = vweird.f32 %v826_v17  ;;  %v836_v28 = vand.u32 2147483647, %v826_v17 }
 0xa09   :  { %v868_v11 = vmul.f32 %v1615_v36, %v867_v10 }
 0xa0a   :  { %v839_v30 = vor.u32 1.1754944e-38, %v838_v27  ;;  %vm837_vm12 = vcmp.eq.f32.partialorder %v836_v28, 8.507059e+37 }
 0xa0b   :  { %v869_v12 = vadd.f32 %v1615_v36, %v868_v11 }
 0xa0d   :  { %v873_v16 = vsel %vm872_vm7, %v1615_v36, %v869_v12 }
 0xa0e   :  { %v878_v20 = vsel %vm875_vm8, %v877_v18, %v873_v16  ;;  %v1619_v22 = vpop.eup %1618 }
 0xa0f   :  { %v828_v23 = vmul.f32 %v1619_v22, %v826_v17  ;;  %vm833_vm9 = vweird.f32 %v1619_v22  ;;  %v881_v41 = vmul.f32 %v878_v20, %v2065_v4 }
 0xa10   :  { %vm834_vm11 = vmor %vm832_vm10, %vm833_vm9 }
 0xa11   :  { %v829_v24 = vsub.f32 1.0, %v828_v23 }
 0xa13   :  { %v830_v25 = vmul.f32 %v1619_v22, %v829_v24 }
 0xa15   :  { %v831_v26 = vadd.f32 %v1619_v22, %v830_v25 }
 0xa17   :  { %v835_v29 = vsel %vm834_vm11, %v1619_v22, %v831_v26 }
 0xa18   :  { %v840_v39 = vsel %vm837_vm12, %v839_v30, %v835_v29 }
 0xa19   :  { %v843_v54 = vmul.f32 %v840_v39, %v2061_v60 }
 0xa4f   :  { %v884_v19 = vpop.permute.xlu2 %883 }
 0xa50   :  { %v886_v21 = vmul.f32 %v884_v19, %v878_v20 }
 0xa52   :  { %888 = vrot.lane.b32.xlu1 %v886_v21, %s1798_s23 }
 0xa6d   :  { %v846_v32 = vpop.permute.xlu1 %845 }
 0xa6e   :  { %v848_v40 = vmul.f32 %v846_v32, %v840_v39 }
 0xa70   :  { %850 = vrot.lane.b32.xlu0 %v848_v40, %s1798_s23 }
 0xac4   :  { %v889_v48 = vpop.permute.xlu1 %888 }
 0xac5   :  { %v2090_v50 = vadd.f32 %v889_v48, %v881_v41 }
 0xac7   :  { %1620 = vtanh.f32 %v2090_v50 }
 0xacd   :  { %v1621_v51 = vpop.eup %1620 }
 0xace   :  { %894 = vrot.lane.b32.xlu0 %v1621_v51, %s1805_s22 }
 0xae2   :  { %v851_v55 = vpop.permute.xlu0 %850 }
 0xae3   :  { %v2095_v56 = vadd.f32 %v851_v55, %v843_v54 }
 0xae5   :  { %1622 = vtanh.f32 %v2095_v56 }
 0xaeb   :  { %v1623_v57 = vpop.eup %1622 }
 0xaec   :  { %856 = vrot.lane.b32.xlu2 %v1623_v57, %s1805_s22 }
 0xb40   :  { %v895_v58 = vpop.permute.xlu0 %894 }
 0xb41   :  { %v897_v59 = vmul.f32 %v895_v58, %v878_v20  ;;  %v267_v58 = vld [vmem:[%s266_s21] ss:$8 sm:$0x3] }
 0xb43   :  { %899 = vrot.lane.b32.xlu1 %v897_v59, %s1798_s23 }
 0xb46   :  { %v857_v61 = vpop.permute.xlu2 %856 }
 0xb47   :  { %v859_v62 = vmul.f32 %v857_v61, %v840_v39 }
 0xb49   :  { %903 = vrot.lane.b32.xlu2 %v859_v62, %s1805_s22 }
 0xba3   :  { %v904_v4 = vpop.permute.xlu2 %903 }
 0xbb5   :  { %v900_v5 = vpop.permute.xlu1 %899 }
 0xbb6   :  { %v906_v60 = vsel %vm315_vm0, %v900_v5, %v904_v4  ;;  %v2126_v5 = vld [vmem:[#allocation6 + $0x110] ss:$0 sm:$0xff] }
 0xbb7   :  { %1511 = vmatmul.msk.f32.vlgmr.msra.gmra.mxu1 %vm390_vm6, %v906_v60  ;;  %1512 = vmatmul.msk.f32.vlgmr.msra.gmra.mxu2 %vm390_vm6, %v906_v60 }
 0xc34   :  { %v927_v6 = vpop.f32.mrf.mxu1 }
 0xc35   :  { %v950_v7 = vadd.f32 %v927_v6, %v1979_v53 }
 0xc37   :  { %1624 = vtanh.f32 %v950_v7  ;;  %v1513_v37 = vmul.f32 -1.442695, %v950_v7 }
 0xc3a   :  { %v947_v9 = vpop.f32.mrf.mxu2 }
 0xc3b   :  { %v988_v52 = vadd.f32 %v947_v9, %v256_v63 }
 0xc3d   :  { %v1625_v33 = vpop.eup %1624  ;;  %1626 = vtanh.f32 %v988_v52  ;;  %v1514_v42 = vmul.f32 -1.442695, %v988_v52 }
 0xc3e   :  { %973 = vrot.lane.b32.xlu0 %v1625_v33, %s1805_s22  ;;  %1628 = vpow2.f32 %v1513_v37 }
 0xc3f   :  { %1630 = vpow2.f32 %v1514_v42 }
 0xc43   :  { %v1627_v35 = vpop.eup %1626 }
 0xc44   :  { %1011 = vrot.lane.b32.xlu1 %v1627_v35, %s1805_s22  ;;  %v1629_v44 = vpop.eup %1628 }
 0xc45   :  { %v954_v53 = vadd.f32 1.0, %v1629_v44  ;;  %v1631_v45 = vpop.eup %1630 }
 0xc46   :  { %v992_v46 = vadd.f32 1.0, %v1631_v45 }
 0xc47   :  { %1632 = vrcp.f32 %v954_v53  ;;  %v966_v43 = vand.u32 2147483648, %v954_v53  ;;  %vm960_vm14 = vweird.f32 %v954_v53  ;;  %v964_v10 = vand.u32 2147483647, %v954_v53 }
 0xc48   :  { %1634 = vrcp.f32 %v992_v46  ;;  %v1004_v17 = vand.u32 2147483648, %v992_v46  ;;  %vm998_vm4 = vweird.f32 %v992_v46  ;;  %v1002_v19 = vand.u32 2147483647, %v992_v46 }
 0xc49   :  { %v967_v13 = vor.u32 1.1754944e-38, %v966_v43  ;;  %vm965_vm2 = vcmp.eq.f32.partialorder %v964_v10, 8.507059e+37 }
 0xc4a   :  { %v1005_v21 = vor.u32 1.1754944e-38, %v1004_v17  ;;  %vm1003_vm7 = vcmp.eq.f32.partialorder %v1002_v19, 8.507059e+37 }
 0xc4d   :  { %v1633_v47 = vpop.eup %1632 }
 0xc4e   :  { %v956_v0 = vmul.f32 %v1633_v47, %v954_v53  ;;  %v1635_v1 = vpop.eup %1634  ;;  %vm961_vm13 = vweird.f32 %v1633_v47 }
 0xc4f   :  { %v994_v34 = vmul.f32 %v1635_v1, %v992_v46  ;;  %vm962_vm15 = vmor %vm960_vm14, %vm961_vm13  ;;  %vm999_vm3 = vweird.f32 %v1635_v1 }
 0xc50   :  { %v957_v2 = vsub.f32 1.0, %v956_v0  ;;  %vm1000_vm5 = vmor %vm998_vm4, %vm999_vm3 }
 0xc51   :  { %v995_v36 = vsub.f32 1.0, %v994_v34 }
 0xc52   :  { %v958_v3 = vmul.f32 %v1633_v47, %v957_v2 }
 0xc53   :  { %v996_v11 = vmul.f32 %v1635_v1, %v995_v36 }
 0xc54   :  { %v959_v38 = vadd.f32 %v1633_v47, %v958_v3 }
 0xc55   :  { %v997_v14 = vadd.f32 %v1635_v1, %v996_v11 }
 0xc56   :  { %v963_v12 = vsel %vm962_vm15, %v1633_v47, %v959_v38 }
 0xc57   :  { %v968_v16 = vsel %vm965_vm2, %v967_v13, %v963_v12  ;;  %v1001_v20 = vsel %vm1000_vm5, %v1635_v1, %v997_v14 }
 0xc58   :  { %v1006_v23 = vsel %vm1003_vm7, %v1005_v21, %v1001_v20  ;;  %v971_v25 = vmul.f32 %v968_v16, %v2095_v56  ;;  %v278_v56 = vld [vmem:[%s277_s20] ss:$8 sm:$0x3] }
 0xc59   :  { %v1009_v29 = vmul.f32 %v1006_v23, %v2090_v50  ;;  %v280_v57 = vperm.slane %v278_v56, 0 }
 0xc5b   :  { %v282_v59 = vsel %vm125_vm1, %v267_v58, %v280_v57 }
 0xcb0   :  { %v974_v15 = vpop.permute.xlu0 %973 }
 0xcb1   :  { %v976_v18 = vmul.f32 %v974_v15, %v968_v16 }
 0xcb3   :  { %978 = vrot.lane.b32.xlu2 %v976_v18, %s1798_s23 }
 0xcb6   :  { %v1012_v22 = vpop.permute.xlu1 %1011 }
 0xcb7   :  { %v1014_v24 = vmul.f32 %v1012_v22, %v1006_v23 }
 0xcb9   :  { %1016 = vrot.lane.b32.xlu0 %v1014_v24, %s1798_s23 }
 0xd0d   :  { %v979_v26 = vpop.permute.xlu2 %978 }
 0xd0e   :  { %v2111_v27 = vadd.f32 %v979_v26, %v971_v25 }
 0xd10   :  { %1636 = vtanh.f32 %v2111_v27 }
 0xd16   :  { %v1637_v28 = vpop.eup %1636 }
 0xd17   :  { %984 = vrot.lane.b32.xlu1 %v1637_v28, %s1805_s22 }
 0xd2b   :  { %v1017_v30 = vpop.permute.xlu0 %1016 }
 0xd2c   :  { %v2116_v32 = vadd.f32 %v1017_v30, %v1009_v29 }
 0xd2e   :  { %1638 = vtanh.f32 %v2116_v32 }
 0xd34   :  { %v1639_v39 = vpop.eup %1638 }
 0xd35   :  { %1022 = vrot.lane.b32.xlu2 %v1639_v39, %s1805_s22  ;;  %v304_v39 = vld [vmem:[%s303_s8] ss:$8 sm:$0x3] }
 0xd89   :  { %v985_v40 = vpop.permute.xlu1 %984 }
 0xd8a   :  { %v987_v41 = vmul.f32 %v985_v40, %v968_v16 }
 0xd8c   :  { %1031 = vrot.lane.b32.xlu1 %v987_v41, %s1805_s22  ;;  %v306_v41 = vperm.slane %v304_v39, 0 }
 0xd8f   :  { %v1023_v48 = vpop.permute.xlu2 %1022 }
 0xd90   :  { %v1025_v51 = vmul.f32 %v1023_v48, %v1006_v23 }
 0xd92   :  { %1027 = vrot.lane.b32.xlu0 %v1025_v51, %s1798_s23  ;;  %v293_v51 = vld [vmem:[%s292_s9] ss:$8 sm:$0x3] }
 0xdfe   :  { %v1032_v54 = vpop.permute.xlu1 %1031 }
 0xe04   :  { %v1028_v55 = vpop.permute.xlu0 %1027 }
 0xe05   :  { %v1034_v50 = vsel %vm315_vm0, %v1028_v55, %v1032_v54  ;;  %v308_v54 = vsel %vm125_vm1, %v293_v51, %v306_v41 }
 0xe06   :  { %1515 = vmatmul.msk.f32.vlgmr.msra.gmra.mxu3 %vm390_vm6, %v1034_v50  ;;  %1516 = vmatmul.msk.f32.vlgmr.msrb.gmra.mxu0 %vm390_vm6, %v1034_v50 }
 0xe83   :  { %v1075_v61 = vpop.f32.mrf.mxu0 }
 0xe84   :  { %v1116_v62 = vadd.f32 %v1075_v61, %v282_v59 }
 0xe86   :  { %1640 = vtanh.f32 %v1116_v62  ;;  %v1518_v63 = vmul.f32 -1.442695, %v1116_v62 }
 0xe89   :  { %v1055_v4 = vpop.f32.mrf.mxu3 }
 0xe8a   :  { %v1078_v60 = vadd.f32 %v2126_v5, %v1055_v4 }
 0xe8c   :  { %v1641_v49 = vpop.eup %1640  ;;  %1642 = vtanh.f32 %v1078_v60  ;;  %v1517_v31 = vmul.f32 -1.442695, %v1078_v60 }
 0xe8d   :  { %1139 = vrot.lane.b32.xlu0 %v1641_v49, %s1805_s22 }
 0xe8e   :  { %1644 = vpow2.f32 %v1517_v31 }
 0xe92   :  { %v1643_v6 = vpop.eup %1642 }
 0xe93   :  { %1101 = vrot.lane.b32.xlu2 %v1643_v6, %s1805_s22 }
 0xe94   :  { %v1645_v7 = vpop.eup %1644 }
 0xe95   :  { %v1082_v8 = vadd.f32 1.0, %v1645_v7 }
 0xe97   :  { %1646 = vrcp.f32 %v1082_v8  ;;  %v1094_v53 = vand.u32 2147483648, %v1082_v8  ;;  %vm1088_vm9 = vweird.f32 %v1082_v8  ;;  %v1092_v45 = vand.u32 2147483647, %v1082_v8 }
 0xe98   :  { %1648 = vpow2.f32 %v1518_v63 }
 0xe99   :  { %v1095_v0 = vor.u32 1.1754944e-38, %v1094_v53  ;;  %vm1093_vm11 = vcmp.eq.f32.partialorder %v1092_v45, 8.507059e+37 }
 0xe9d   :  { %v1647_v9 = vpop.eup %1646 }
 0xe9e   :  { %v1084_v52 = vmul.f32 %v1647_v9, %v1082_v8  ;;  %v1649_v33 = vpop.eup %1648  ;;  %vm1089_vm8 = vweird.f32 %v1647_v9 }
 0xe9f   :  { %v1120_v37 = vadd.f32 1.0, %v1649_v33  ;;  %vm1090_vm10 = vmor %vm1088_vm9, %vm1089_vm8 }
 0xea0   :  { %v1085_v35 = vsub.f32 1.0, %v1084_v52 }
 0xea1   :  { %1650 = vrcp.f32 %v1120_v37  ;;  %v1132_v10 = vand.u32 2147483648, %v1120_v37  ;;  %vm1126_vm13 = vweird.f32 %v1120_v37  ;;  %v1130_v11 = vand.u32 2147483647, %v1120_v37 }
 0xea2   :  { %v1086_v42 = vmul.f32 %v1647_v9, %v1085_v35 }
 0xea3   :  { %v1133_v13 = vor.u32 1.1754944e-38, %v1132_v10  ;;  %vm1131_vm15 = vcmp.eq.f32.partialorder %v1130_v11, 8.507059e+37 }
 0xea4   :  { %v1087_v44 = vadd.f32 %v1647_v9, %v1086_v42 }
 0xea6   :  { %v1091_v47 = vsel %vm1090_vm10, %v1647_v9, %v1087_v44 }
 0xea7   :  { %v1651_v46 = vpop.eup %1650  ;;  %v1096_v34 = vsel %vm1093_vm11, %v1095_v0, %v1091_v47 }
 0xea8   :  { %v1122_v1 = vmul.f32 %v1651_v46, %v1120_v37  ;;  %vm1127_vm12 = vweird.f32 %v1651_v46  ;;  %v1099_v20 = vmul.f32 %v1096_v34, %v2111_v27 }
 0xea9   :  { %vm1128_vm14 = vmor %vm1126_vm13, %vm1127_vm12  ;;  %vm1377_vm13 = vcmask 33792  }
 0xeaa   :  { %v1123_v36 = vsub.f32 1.0, %v1122_v1 }
 0xeac   :  { %v1124_v38 = vmul.f32 %v1651_v46, %v1123_v36 }
 0xeae   :  { %v1125_v43 = vadd.f32 %v1651_v46, %v1124_v38 }
 0xeb0   :  { %v1129_v12 = vsel %vm1128_vm14, %v1651_v46, %v1125_v43 }
 0xeb1   :  { %v1134_v15 = vsel %vm1131_vm15, %v1133_v13, %v1129_v12 }
 0xeb2   :  { %v1137_v17 = vmul.f32 %v1134_v15, %v2116_v32 }
 0xeed   :  { %v1102_v2 = vpop.permute.xlu2 %1101 }
 0xeee   :  { %v1104_v3 = vmul.f32 %v1102_v2, %v1096_v34 }
 0xef0   :  { %1106 = vrot.lane.b32.xlu1 %v1104_v3, %s1798_s23 }
 0xeff   :  { %v1140_v14 = vpop.permute.xlu0 %1139 }
 0xf00   :  { %v1142_v16 = vmul.f32 %v1140_v14, %v1134_v15 }
 0xf02   :  { %1144 = vrot.lane.b32.xlu2 %v1142_v16, %s1798_s23 }
 0xf5c   :  { %v1145_v18 = vpop.permute.xlu2 %1144 }
 0xf5d   :  { %v2134_v19 = vadd.f32 %v1145_v18, %v1137_v17 }
 0xf5f   :  { %1652 = vtanh.f32 %v2134_v19 }
 0xf62   :  { %v1107_v21 = vpop.permute.xlu1 %1106 }
 0xf63   :  { %v2138_v22 = vadd.f32 %v1107_v21, %v1099_v20 }
 0xf65   :  { %v1653_v23 = vpop.eup %1652  ;;  %1654 = vtanh.f32 %v2138_v22 }
 0xf66   :  { %1150 = vrot.lane.b32.xlu1 %v1653_v23, %s1805_s22 }
 0xf6b   :  { %v1655_v24 = vpop.eup %1654 }
 0xf6c   :  { %1112 = vrot.lane.b32.xlu0 %v1655_v24, %s1805_s22 }
 0xfd8   :  { %v1151_v25 = vpop.permute.xlu1 %1150 }
 0xfd9   :  { %v1153_v26 = vmul.f32 %v1151_v25, %v1134_v15 }
 0xfdb   :  { %1155 = vrot.lane.b32.xlu2 %v1153_v26, %s1798_s23 }
 0xfde   :  { %v1113_v28 = vpop.permute.xlu0 %1112 }
 0xfdf   :  { %v1115_v29 = vmul.f32 %v1113_v28, %v1096_v34 }
 0xfe1   :  { %1159 = vrot.lane.b32.xlu0 %v1115_v29, %s1805_s22 }
0x1035   :  { %v1156_v27 = vpop.permute.xlu2 %1155 }
0x1053   :  { %v1160_v30 = vpop.permute.xlu0 %1159 }
0x1054   :  { %v1162_v32 = vsel %vm315_vm0, %v1156_v27, %v1160_v30 }
0x1055   :  { %1519 = vmatmul.msk.f32.vlgmr.msrb.gmra.mxu1 %vm390_vm6, %v1162_v32  ;;  %1520 = vmatmul.msk.f32.vlgmr.msrb.gmra.mxu2 %vm390_vm6, %v1162_v32 }
0x10d2   :  { %v1183_v40 = vpop.f32.mrf.mxu1 }
0x10d3   :  { %v1206_v48 = vadd.f32 %v2126_v5, %v1183_v40 }
0x10d5   :  { %1656 = vtanh.f32 %v1206_v48  ;;  %v1521_v62 = vmul.f32 -1.442695, %v1206_v48 }
0x10d8   :  { %v1203_v55 = vpop.f32.mrf.mxu2 }
0x10d9   :  { %v1244_v50 = vadd.f32 %v1203_v55, %v308_v54 }
0x10db   :  { %v1657_v56 = vpop.eup %1656  ;;  %1658 = vtanh.f32 %v1244_v50  ;;  %v1522_v58 = vmul.f32 -1.442695, %v1244_v50 }
0x10dc   :  { %1229 = vrot.lane.b32.xlu1 %v1657_v56, %s1805_s22 }
0x10dd   :  { %1660 = vpow2.f32 %v1522_v58 }
0x10e1   :  { %v1659_v57 = vpop.eup %1658 }
0x10e2   :  { %1267 = vrot.lane.b32.xlu2 %v1659_v57, %s1805_s22 }
0x10e3   :  { %v1661_v59 = vpop.eup %1660 }
0x10e4   :  { %v1248_v61 = vadd.f32 1.0, %v1661_v59 }
0x10e6   :  { %1662 = vrcp.f32 %v1248_v61  ;;  %v1260_v63 = vand.u32 2147483648, %v1248_v61  ;;  %vm1254_vm2 = vweird.f32 %v1248_v61  ;;  %v1258_v9 = vand.u32 2147483647, %v1248_v61 }
0x10e7   :  { %1664 = vpow2.f32 %v1521_v62  ;;  %v97_v62 = vld [vmem:[#allocation6 + $0x100] sm:$0xff] }
0x10e8   :  { %v1261_v35 = vor.u32 1.1754944e-38, %v1260_v63  ;;  %vm1259_vm4 = vcmp.eq.f32.partialorder %v1258_v9, 8.507059e+37  ;;  %1369 = vmatpush.msra.mxu0 %v97_v62 }
0x10ec   :  { %v1663_v4 = vpop.eup %1662 }
0x10ed   :  { %v1250_v60 = vmul.f32 %v1663_v4, %v1248_v61  ;;  %v1665_v49 = vpop.eup %1664  ;;  %vm1255_vm1 = vweird.f32 %v1663_v4 }
0x10ee   :  { %v1210_v31 = vadd.f32 1.0, %v1665_v49  ;;  %vm1256_vm3 = vmor %vm1254_vm2, %vm1255_vm1  ;;  %v94_v49 = vld [vmem:[#allocation6 + $0xd0] sm:$0xff] }
0x10ef   :  { %v1251_v6 = vsub.f32 1.0, %v1250_v60  ;;  %v95_v60 = vld [vmem:[#allocation6 + $0xe0] sm:$0xff] }
0x10f0   :  { %1666 = vrcp.f32 %v1210_v31  ;;  %v1222_v0 = vand.u32 2147483648, %v1210_v31  ;;  %vm1216_vm7 = vweird.f32 %v1210_v31  ;;  %v1220_v1 = vand.u32 2147483647, %v1210_v31 }
0x10f1   :  { %v1252_v7 = vmul.f32 %v1663_v4, %v1251_v6 }
0x10f2   :  { %v1223_v34 = vor.u32 1.1754944e-38, %v1222_v0  ;;  %vm1221_vm9 = vcmp.eq.f32.partialorder %v1220_v1, 8.507059e+37 }
0x10f3   :  { %v1253_v8 = vadd.f32 %v1663_v4, %v1252_v7 }
0x10f5   :  { %v1257_v33 = vsel %vm1256_vm3, %v1663_v4, %v1253_v8  ;;  %v96_v4 = vld [vmem:[#allocation6 + $0xf0] sm:$0xff]  ;;  %v99_v8 = vld [vmem:[#allocation6 + $0x120] ss:$0 sm:$0xff] }
0x10f6   :  { %v1667_v52 = vpop.eup %1666  ;;  %v1262_v44 = vsel %vm1259_vm4, %v1261_v35, %v1257_v33  ;;  %1370 = vmatpush.msra.mxu0 %v96_v4 }
0x10f7   :  { %v1212_v37 = vmul.f32 %v1667_v52, %v1210_v31  ;;  %vm1217_vm5 = vweird.f32 %v1667_v52  ;;  %v1265_v43 = vmul.f32 %v1262_v44, %v2134_v19 }
0x10f8   :  { %vm1218_vm8 = vmor %vm1216_vm7, %vm1217_vm5  ;;  %1371 = vmatpush.msra.mxu0 %v95_v60 }
0x10f9   :  { %v1213_v45 = vsub.f32 1.0, %v1212_v37 }
0x10fa   :  { %1372 = vmatpush.msra.mxu0 %v94_v49 }
0x10fb   :  { %v1214_v46 = vmul.f32 %v1667_v52, %v1213_v45 }
0x10fd   :  { %v1215_v47 = vadd.f32 %v1667_v52, %v1214_v46 }
0x10ff   :  { %v1219_v2 = vsel %vm1218_vm8, %v1667_v52, %v1215_v47 }
0x1100   :  { %v1224_v36 = vsel %vm1221_vm9, %v1223_v34, %v1219_v2 }
0x1101   :  { %v1227_v13 = vmul.f32 %v1224_v36, %v2138_v22 }
0x113c   :  { %v1268_v42 = vpop.permute.xlu2 %1267 }
0x113d   :  { %v1270_v53 = vmul.f32 %v1268_v42, %v1262_v44 }
0x113f   :  { %1272 = vrot.lane.b32.xlu1 %v1270_v53, %s1798_s23 }
0x114e   :  { %v1230_v3 = vpop.permute.xlu1 %1229 }
0x114f   :  { %v1232_v38 = vmul.f32 %v1230_v3, %v1224_v36 }
0x1151   :  { %1234 = vrot.lane.b32.xlu0 %v1232_v38, %s1798_s23 }
0x11b1   :  { %v1273_v10 = vpop.permute.xlu1 %1272 }
0x11b2   :  { %v1275_v11 = vadd.f32 %v1273_v10, %v1265_v43 }
0x11b4   :  { %1668 = vtanh.f32 %v1275_v11 }
0x11ba   :  { %v1669_v12 = vpop.eup %1668 }
0x11bb   :  { %1278 = vrot.lane.b32.xlu0 %v1669_v12, %s1805_s22 }
0x11c3   :  { %v1235_v14 = vpop.permute.xlu0 %1234 }
0x11c4   :  { %v1237_v15 = vadd.f32 %v1235_v14, %v1227_v13 }
0x11c6   :  { %1670 = vtanh.f32 %v1237_v15 }
0x11cc   :  { %v1671_v16 = vpop.eup %1670 }
0x11cd   :  { %1240 = vrot.lane.b32.xlu2 %v1671_v16, %s1805_s22 }
0x1227   :  { %v1241_v17 = vpop.permute.xlu2 %1240 }
0x1228   :  { %v1243_v18 = vmul.f32 %v1241_v17, %v1224_v36 }
0x122a   :  { %1287 = vrot.lane.b32.xlu2 %v1243_v18, %s1805_s22 }
0x122d   :  { %v1279_v20 = vpop.permute.xlu0 %1278 }
0x122e   :  { %v1281_v19 = vmul.f32 %v1279_v20, %v1262_v44 }
0x1230   :  { %1283 = vrot.lane.b32.xlu1 %v1281_v19, %s1798_s23 }
0x1284   :  { %v1288_v21 = vpop.permute.xlu2 %1287 }
0x12a2   :  { %v1284_v23 = vpop.permute.xlu1 %1283 }
0x12a3   :  { %v1290_v24 = vsel %vm315_vm0, %v1284_v23, %v1288_v21 }
0x12a4   :  { %1523 = vmatmul.msk.f32.vlgmr.msrb.gmra.mxu3 %vm390_vm6, %v1290_v24 }
0x1327   :  { %v1311_v22 = vpop.f32.mrf.mxu3 }
0x1328   :  { %v1314_v25 = vadd.f32 %v2126_v5, %v1311_v22 }
0x132a   :  { %1672 = vtanh.f32 %v1314_v25  ;;  %v1524_v28 = vmul.f32 -1.442695, %v1314_v25 }
0x132c   :  { %1674 = vpow2.f32 %v1524_v28 }
0x1330   :  { %v1673_v26 = vpop.eup %1672 }
0x1331   :  { %1337 = vrot.lane.b32.xlu0 %v1673_v26, %s1805_s22 }
0x1332   :  { %v1675_v29 = vpop.eup %1674 }
0x1333   :  { %v1318_v27 = vadd.f32 1.0, %v1675_v29 }
0x1335   :  { %1676 = vrcp.f32 %v1318_v27  ;;  %v1330_v48 = vand.u32 2147483648, %v1318_v27  ;;  %vm1324_vm6 = vweird.f32 %v1318_v27  ;;  %v1328_v51 = vand.u32 2147483647, %v1318_v27 }
0x1337   :  { %v1331_v54 = vor.u32 1.1754944e-38, %v1330_v48  ;;  %vm1329_vm12 = vcmp.eq.f32.partialorder %v1328_v51, 8.507059e+37 }
0x133b   :  { %v1677_v30 = vpop.eup %1676 }
0x133c   :  { %v1320_v32 = vmul.f32 %v1677_v30, %v1318_v27  ;;  %vm1325_vm10 = vweird.f32 %v1677_v30 }
0x133d   :  { %vm1326_vm11 = vmor %vm1324_vm6, %vm1325_vm10 }
0x133e   :  { %v1321_v39 = vsub.f32 1.0, %v1320_v32 }
0x1340   :  { %v1322_v40 = vmul.f32 %v1677_v30, %v1321_v39 }
0x1342   :  { %v1323_v41 = vadd.f32 %v1677_v30, %v1322_v40 }
0x1344   :  { %v1327_v5 = vsel %vm1326_vm11, %v1677_v30, %v1323_v41 }
0x1345   :  { %v1332_v50 = vsel %vm1329_vm12, %v1331_v54, %v1327_v5 }
0x1346   :  { %v1335_v57 = vmul.f32 %v1332_v50, %v1237_v15 }
0x13a3   :  { %v1338_v55 = vpop.permute.xlu0 %1337 }
0x13a4   :  { %v1340_v56 = vmul.f32 %v1338_v55, %v1332_v50 }
0x13a6   :  { %1342 = vrot.lane.b32.xlu1 %v1340_v56, %s1798_s23 }
0x1418   :  { %v1343_v58 = vpop.permute.xlu1 %1342 }
0x1419   :  { %v1345_v59 = vadd.f32 %v1343_v58, %v1335_v57 }
0x141b   :  { %1678 = vtanh.f32 %v1345_v59 }
0x1421   :  { %v1679_v61 = vpop.eup %1678 }
0x1422   :  { %1348 = vrot.lane.b32.xlu2 %v1679_v61, %s1805_s22 }
0x147c   :  { %v1349_v6 = vpop.permute.xlu2 %1348 }
0x147d   :  { %v1351_v31 = vmul.f32 %v1349_v6, %v1332_v50 }
0x147f   :  { %1353 = vrot.lane.b32.xlu0 %v1351_v31, %s1798_s23 }
0x14f1   :  { %v1354_v7 = vpop.permute.xlu0 %1353 }
0x14f2   :  { %1525 = vmatmul.msk.f32.vlgmr.msra.gmra.mxu0 %vm315_vm0, %v1354_v7 }
0x156f   :  { %v1374_v63 = vpop.f32.mrf.mxu0 }
0x1570   :  { %v1375_v9 = vadd.f32 %v1374_v63, %v99_v8 }
0x1572   :  { %1378 = vst.msk [vmem:[#allocation10] sm:$0x3] %vm1377_vm13, %v1375_v9 }
0x1573   :  { %1389 = dma.vmem_to_hbm [thread:$0]  %s1385_s3, 32, %s1387_s11, [#allocation4]  }
0x1574   :  { %1795 = dma.done.wait [#allocation4], 32  }
0x1575   :  { %1796 = vsyncadd [#allocation4], 4294967264 }
0x1576   :  { %1394 = vsyncpa [#allocation3], 1 }
0x1577   :  { %1395 = vsyncpa [#allocation8], 1 }
0x1578   :  { %1396 = vsyncpa [#allocation4], 1 }
0x1579   :  { %1397 = vsyncpa [#allocation5], 1 }

</bundles_post_ra>
